<compile_context>
chip_gen: v5e
topology: v5e:2x2
jax: 0.10.0
libtpu: 0.0.40
codegen_flags: <defaults>
</compile_context>

<pallas_src>
import functools

import numpy as np
import jax
import jax.numpy as jnp
from jax import lax
from jax.experimental import pallas as pl
from jax.experimental.pallas import tpu as pltpu


# ----------------------------- host-side constant folding -----------------------------

def _gaussian_kernel_1d(filter_size: int, sigma: float) -> np.ndarray:
    # Matches torchvision.transforms.functional.gaussian_blur kernel construction.
    half = (filter_size - 1) * 0.5
    xs = np.linspace(-half, half, filter_size)
    pdf = np.exp(-0.5 * (xs / float(sigma)) ** 2)
    return pdf / pdf.sum()


def _reflect(p: int, n: int) -> int:
    # Reflect padding index (no edge repeat) -- torch / numpy 'reflect' semantics.
    if p < 0:
        return -p
    if p >= n:
        return 2 * n - 2 - p
    return p


@functools.lru_cache(maxsize=None)
def _blur_matrices(H: int, W: int, filter_size: int, sigma: float):
    """Gv (H,H), Gh (W,W) with reflect padding baked in:  blur(X) = Gv @ X @ Gh."""
    pad = filter_size // 2
    k1 = _gaussian_kernel_1d(filter_size, sigma)
    Gv = np.zeros((H, H), np.float64)
    for m in range(H):
        for i in range(filter_size):
            Gv[m, _reflect(m - pad + i, H)] += k1[i]
    Gh = np.zeros((W, W), np.float64)
    for n in range(W):
        for j in range(filter_size):
            Gh[_reflect(n - pad + j, W), n] += k1[j]
    return Gv, Gh


def _sobel_factors(H: int, W: int):
    """1-D Sobel factors ("valid"):  gx = Sv @ u @ Dh,  gy = Dv @ u @ Sh."""
    Ho, Wo = H - 2, W - 2
    Sv = np.zeros((Ho, H), np.float64)
    Dv = np.zeros((Ho, H), np.float64)
    for m in range(Ho):
        Sv[m, m] += 1.0; Sv[m, m + 1] += 2.0; Sv[m, m + 2] += 1.0
        Dv[m, m] += -1.0; Dv[m, m + 2] += 1.0
    Sh = np.zeros((W, Wo), np.float64)
    Dh = np.zeros((W, Wo), np.float64)
    for n in range(Wo):
        Sh[n, n] += 1.0; Sh[n + 1, n] += 2.0; Sh[n + 2, n] += 1.0
        Dh[n, n] += -1.0; Dh[n + 2, n] += 1.0
    return Sv, Dv, Sh, Dh


@functools.lru_cache(maxsize=None)
def _kron_operators(H: int, W: int, filter_size: int, sigma: float, n_cols: int):
    """Fold blur + Sobel into two (H*W, n_cols) operators (columns zero-padded to n_cols)."""
    Gv, Gh = _blur_matrices(H, W, filter_size, sigma)
    Sv, Dv, Sh, Dh = _sobel_factors(H, W)
    Ax, Bx = Sv @ Gv, Gh @ Dh          # gx = Ax @ X @ Bx
    Ay, By = Dv @ Gv, Gh @ Sh          # gy = Ay @ X @ By
    # Row-major flatten:  vec(A @ X @ B)[i*Wo+j] = sum_{k,l} X[k,l] * A[i,k] * B[l,j]
    #                  => vec(gx) = vec(X) @ kron(A^T, B)
    KxT = np.kron(Ax.T, Bx)            # (H*W, Ho*Wo)
    KyT = np.kron(Ay.T, By)
    hw, howo = KxT.shape
    kx = np.zeros((hw, n_cols), np.float32); kx[:, :howo] = KxT
    ky = np.zeros((hw, n_cols), np.float32); ky[:, :howo] = KyT
    return kx, ky


# ------------------------------ hardware-aware sizing ----------------------------------

def _vmem_limit_bytes() -> int:
    cap = None
    try:
        cap = int(getattr(pltpu.get_tpu_info(), "vmem_capacity_bytes", 0)) or None
    except Exception:
        cap = None
    if cap is None:
        # Safe on every generation (v7x has 64 MiB of VMEM per TensorCore).
        return 48 * 1024 * 1024
    # ~3/4 of physical VMEM, capped: ~48 MiB on v7x, 96 MiB on v5e/v6e.
    return int(min((cap * 3) // 4, 96 * 1024 * 1024))


def _const_spec(shape, index_map):
    """BlockSpec for an operand whose block never changes across the grid: single-buffered
    (pl.Buffered(1)) to halve its VMEM footprint; falls back to default double-buffering."""
    try:
        return pl.BlockSpec(shape, index_map, pipeline_mode=pl.Buffered(1))
    except Exception:
        return pl.BlockSpec(shape, index_map)


# --------------------------------------- kernels ---------------------------------------

def _kron_kernel(x_ref, kx_ref, ky_ref, o_ref, *, thr2, precision):
    # x_ref:  (NB, H*W)        flattened image block (batch in the matmul M dim)
    # k*_ref: (H*W, COLB)      column blocks of the folded operators
    # o_ref:  (NB, COLB)       lane-dense edge-map block (padded columns sliced off later)
    xf = x_ref[...]
    gx = jnp.dot(xf, kx_ref[...], preferred_element_type=jnp.float32, precision=precision)
    gy = jnp.dot(xf, ky_ref[...], preferred_element_type=jnp.float32, precision=precision)
    m2 = gx * gx + gy * gy                      # squared magnitude (no sqrt needed)
    o_ref[...] = (m2 > thr2).astype(jnp.float32)


def _sep_kernel(x_ref, gv_ref, gh_ref, o_ref, *, thr2, precision):
    # x_ref: (1, H, W) image, gv_ref: (H, H), gh_ref: (W, W), o_ref: (1, H-2, W-2)
    x = x_ref[0]
    # Shared gaussian blur (reflect padding baked into Gv / Gh): two MXU matmuls, blur
    # computed once and reused by both gradient directions.
    u = jnp.dot(gv_ref[...], x, preferred_element_type=jnp.float32, precision=precision)
    u = jnp.dot(u, gh_ref[...], preferred_element_type=jnp.float32, precision=precision)
    # 3-tap Sobel factors as shift-adds (VPU / XLU work, off the MXU).
    dh = u[:, 2:] - u[:, :-2]                                  # (H,   W-2)
    gx = dh[:-2, :] + 2.0 * dh[1:-1, :] + dh[2:, :]            # (H-2, W-2)
    sh = u[:, :-2] + 2.0 * u[:, 1:-1] + u[:, 2:]               # (H,   W-2)
    gy = sh[2:, :] - sh[:-2, :]                                # (H-2, W-2)
    m2 = gx * gx + gy * gy
    o_ref[0] = (m2 > thr2).astype(jnp.float32)


# -------------------------------------- wrappers ----------------------------------------

def _canny_kron(xs, H, W, sigma, threshold, filter_size, batch_block, matmul_dtype):
    ntot = xs.shape[0]
    Ho, Wo = H - 2, W - 2
    hw, howo = H * W, Ho * Wo
    howo_pad = ((howo + 127) // 128) * 128       # lane-dense (128-multiple) output columns
    colb = 128                                   # >= 2 grid steps whenever howo_pad >= 256
    vmem_limit = _vmem_limit_bytes()

    # Per-step footprint: double-buffered operator column blocks + per-image in/out rows.
    const_bytes = 2 * 2 * hw * colb * 4
    per_img = 2 * (hw + colb) * 4
    budget = max(vmem_limit // 2 - const_bytes, per_img)
    nb = int(max(1, min(batch_block, budget // per_img, ntot)))
    if nb >= ntot or ntot < 8:
        nb = ntot                                # one block spans the full batch dim
    else:
        nb = max(8, (nb // 8) * 8)               # multiple of 8 keeps blocks (8,128)-friendly

    n_pad = (-ntot) % nb
    if n_pad:
        xs = jnp.concatenate([xs, jnp.zeros((n_pad, H, W), xs.dtype)], axis=0)

    kx_np, ky_np = _kron_operators(H, W, filter_size, float(sigma), howo_pad)
    kxT = jnp.asarray(kx_np, dtype=matmul_dtype)
    kyT = jnp.asarray(ky_np, dtype=matmul_dtype)
    xf = xs.reshape(xs.shape[0], hw).astype(matmul_dtype)

    precision = (lax.Precision.HIGHEST if matmul_dtype == jnp.float32
                 else lax.Precision.DEFAULT)
    kernel = functools.partial(_kron_kernel, thr2=float(threshold) ** 2,
                               precision=precision)

    n_cb = howo_pad // colb
    n_bb = xf.shape[0] // nb
    out = pl.pallas_call(
        kernel,
        out_shape=jax.ShapeDtypeStruct((xf.shape[0], howo_pad), jnp.float32),
        grid=(n_cb, n_bb),                       # operator column blocks outer: each read once
        in_specs=[
            pl.BlockSpec((nb, hw), lambda c, b: (b, 0)),
            pl.BlockSpec((hw, colb), lambda c, b: (0, c)),
            pl.BlockSpec((hw, colb), lambda c, b: (0, c)),
        ],
        out_specs=pl.BlockSpec((nb, colb), lambda c, b: (b, c)),
        compiler_params=pltpu.CompilerParams(
            dimension_semantics=("parallel", "parallel"),
            vmem_limit_bytes=vmem_limit),
    )(xf, kxT, kyT)
    return out[:ntot, :howo].reshape(ntot, Ho, Wo)


def _canny_separable(xs, H, W, sigma, threshold, filter_size, matmul_dtype):
    ntot = xs.shape[0]
    Ho, Wo = H - 2, W - 2
    Gv, Gh = _blur_matrices(H, W, filter_size, float(sigma))
    gv = jnp.asarray(Gv, dtype=matmul_dtype)
    gh = jnp.asarray(Gh, dtype=matmul_dtype)
    xs = xs.astype(matmul_dtype)

    precision = (lax.Precision.HIGHEST if matmul_dtype == jnp.float32
                 else lax.Precision.DEFAULT)
    kernel = functools.partial(_sep_kernel, thr2=float(threshold) ** 2,
                               precision=precision)

    return pl.pallas_call(
        kernel,
        out_shape=jax.ShapeDtypeStruct((ntot, Ho, Wo), jnp.float32),
        grid=(ntot,),
        in_specs=[
            pl.BlockSpec((1, H, W), lambda i: (i, 0, 0)),
            _const_spec((H, H), lambda i: (0, 0)),    # Gv: constant across the grid
            _const_spec((W, W), lambda i: (0, 0)),    # Gh: constant across the grid
        ],
        out_specs=pl.BlockSpec((1, Ho, Wo), lambda i: (i, 0, 0)),
        compiler_params=pltpu.CompilerParams(
            dimension_semantics=("parallel",),
            vmem_limit_bytes=_vmem_limit_bytes()),
    )(xs, gv, gh)


def differentiable_canny(x, sigma: float = 1.0, threshold: float = 0.2,
                         filter_size: int = 5, batch_block: int = 8,
                         kron_max_pixels: int = 4096,
                         matmul_dtype=jnp.float32):
    """x: (N, 1, H, W) float. Returns (N, 1, H-2, W-2) float32 edge map in {0., 1.}."""
    N, C, H, W = x.shape
    assert C == 1, "reference Sobel conv weight is (1,1,3,3) -> requires C == 1"
    assert threshold >= 0.0
    assert filter_size % 2 == 1, "torchvision gaussian_blur requires an odd kernel size"
    pad = filter_size // 2
    assert H > max(2, pad) and W > max(2, pad), "image too small for reflect pad / Sobel"

    xs = x.reshape(N * C, H, W).astype(jnp.float32)
    if H * W <= kron_max_pixels:
        out = _canny_kron(xs, H, W, sigma, threshold, filter_size,
                          batch_block, matmul_dtype)
    else:
        out = _canny_separable(xs, H, W, sigma, threshold, filter_size, matmul_dtype)
    return out.reshape(N, C, H - 2, W - 2)


# ------------------------------ pure-JAX reference (check) ------------------------------

def _reference_canny(x, sigma=1.0, threshold=0.2, filter_size=5):
    N, C, H, W = x.shape
    pad = filter_size // 2
    k1 = jnp.asarray(_gaussian_kernel_1d(filter_size, sigma), jnp.float32)
    img = x.reshape(N * C, H, W).astype(jnp.float32)
    xp = jnp.pad(img, ((0, 0), (pad, pad), (pad, pad)), mode="reflect")
    u = sum(k1[i] * xp[:, i:i + H, :] for i in range(filter_size))
    u = sum(k1[j] * u[:, :, j:j + W] for j in range(filter_size))
    gx = (-u[:, :-2, :-2] + u[:, :-2, 2:]
          - 2.0 * u[:, 1:-1, :-2] + 2.0 * u[:, 1:-1, 2:]
          - u[:, 2:, :-2] + u[:, 2:, 2:])
    gy = (-u[:, :-2, :-2] - 2.0 * u[:, :-2, 1:-1] - u[:, :-2, 2:]
          + u[:, 2:, :-2] + 2.0 * u[:, 2:, 1:-1] + u[:, 2:, 2:])
    edges = (jnp.sqrt(gx * gx + gy * gy) > threshold).astype(jnp.float32)
    return edges.reshape(N, C, H - 2, W - 2)


if __name__ == "__main__":
    key = jax.random.PRNGKey(0)
    x = jax.random.uniform(key, (2, 1, 16, 16), dtype=jnp.float32)

    ref = _reference_canny(x, sigma=1.0, threshold=0.2, filter_size=5)

    # Small-image (kron-folded) path -- the default for 16x16.
    y = differentiable_canny(x, sigma=1.0, threshold=0.2, filter_size=5)
    jax.block_until_ready(y)
    assert y.shape == (2, 1, 14, 14) and y.dtype == jnp.float32, (y.shape, y.dtype)
    assert float(jnp.mean(jnp.abs(y - ref))) <= 0.01

    # Larger-image (shared-blur + shift-add Sobel) path, forced on the same input.
    y2 = differentiable_canny(x, sigma=1.0, threshold=0.2, filter_size=5,
                              kron_max_pixels=0)
    jax.block_until_ready(y2)
    assert y2.shape == (2, 1, 14, 14) and y2.dtype == jnp.float32
    assert float(jnp.mean(jnp.abs(y2 - ref))) <= 0.01

    print("KERNEL_OK")
</pallas_src>

<mosaic_0001>
module attributes {stable_mosaic.version = 11 : i64} {
  func.func @_kron_kernel(%arg0: i32, %arg1: i32, %arg2: memref<2x256xf32, #tpu.memory_space<vmem>>, %arg3: memref<256x128xf32, #tpu.memory_space<vmem>>, %arg4: memref<256x128xf32, #tpu.memory_space<vmem>>, %arg5: memref<2x128xf32, #tpu.memory_space<vmem>>) attributes {dimension_semantics = [#tpu.dimension_semantics<parallel>, #tpu.dimension_semantics<parallel>], iteration_bounds = array<i64: 2, 1>, scalar_prefetch = 0 : i64, scratch_operands = 0 : i64, tpu.core_type = #tpu.core_type<tc>, window_params = [{transform_indices = @transform_0, window_bounds = array<i64: 2, 256>}, {transform_indices = @transform_1, window_bounds = array<i64: 256, 128>}, {transform_indices = @transform_2, window_bounds = array<i64: 256, 128>}, {transform_indices = @transform_3, window_bounds = array<i64: 2, 128>}]} {
    %c0 = arith.constant 0 : index
    %c0_0 = arith.constant 0 : index
    %0 = vector.load %arg2[%c0, %c0_0] : memref<2x256xf32, #tpu.memory_space<vmem>>, vector<2x256xf32>
    %c0_1 = arith.constant 0 : index
    %c0_2 = arith.constant 0 : index
    %1 = vector.load %arg3[%c0_1, %c0_2] : memref<256x128xf32, #tpu.memory_space<vmem>>, vector<256x128xf32>
    %cst = arith.constant dense<0.000000e+00> : vector<2x128xf32>
    %2 = tpu.matmul %0, %1, %cst {dimension_numbers = #tpu.dot_dimension_numbers<[1], [0], [0], [1], [0, 0, 1, 1], [], []>, precision = #tpu.contract_precision<fp32>} : vector<2x256xf32>, vector<256x128xf32>, vector<2x128xf32> -> vector<2x128xf32>
    %c0_3 = arith.constant 0 : index
    %c0_4 = arith.constant 0 : index
    %3 = vector.load %arg4[%c0_3, %c0_4] : memref<256x128xf32, #tpu.memory_space<vmem>>, vector<256x128xf32>
    %cst_5 = arith.constant dense<0.000000e+00> : vector<2x128xf32>
    %4 = tpu.matmul %0, %3, %cst_5 {dimension_numbers = #tpu.dot_dimension_numbers<[1], [0], [0], [1], [0, 0, 1, 1], [], []>, precision = #tpu.contract_precision<fp32>} : vector<2x256xf32>, vector<256x128xf32>, vector<2x128xf32> -> vector<2x128xf32>
    %5 = arith.mulf %2, %2 : vector<2x128xf32>
    %6 = arith.mulf %4, %4 : vector<2x128xf32>
    %7 = arith.addf %5, %6 : vector<2x128xf32>
    %cst_6 = arith.constant 4.000000e-02 : f32
    %8 = vector.broadcast %cst_6 : f32 to vector<2x128xf32>
    %9 = arith.cmpf ogt, %7, %8 : vector<2x128xf32>
    %10 = arith.extui %9 : vector<2x128xi1> to vector<2x128xi32>
    %11 = arith.sitofp %10 : vector<2x128xi32> to vector<2x128xf32>
    %c0_7 = arith.constant 0 : index
    %c0_8 = arith.constant 0 : index
    %12 = vector.load %arg5[%c0_7, %c0_8] : memref<2x128xf32, #tpu.memory_space<vmem>>, vector<2x128xf32>
    tpu.vector_store %arg5[%c0_7, %c0_8], %11 {strides = array<i32>} : memref<2x128xf32, #tpu.memory_space<vmem>>, vector<2x128xf32>,
    return
  }
  func.func @transform_0(%arg0: i32, %arg1: i32) -> (i32, i32) {
    %c0_i32 = arith.constant 0 : i32
    %c0_i32_0 = arith.constant 0 : i32
    return %arg1, %c0_i32 : i32, i32
  }
  func.func @transform_1(%arg0: i32, %arg1: i32) -> (i32, i32) {
    %c0_i32 = arith.constant 0 : i32
    %c0_i32_0 = arith.constant 0 : i32
    return %c0_i32, %arg0 : i32, i32
  }
  func.func @transform_2(%arg0: i32, %arg1: i32) -> (i32, i32) {
    %c0_i32 = arith.constant 0 : i32
    %c0_i32_0 = arith.constant 0 : i32
    return %c0_i32, %arg0 : i32, i32
  }
  func.func @transform_3(%arg0: i32, %arg1: i32) -> (i32, i32) {
    %c0_i32 = arith.constant 0 : i32
    return %arg1, %arg0 : i32, i32
  }
}

</mosaic_0001>

<bundles_post_ra>
// kernel: tpu_custom_call.1
= control target key start
LH: loop header
LB: loop body
LE: loop exit
PB: predicated region body
PF: predicated region fallthrough
CT: control target
= control target key end

     0   :  { %8 = vsyncpa [#allocation3], 0  ;;  %s3401_s0 = inlined_call_operand.hbm [shape: f32[2,256], index: 0, kind: input, shape index: {}]   ;;  %s3402_s1 = inlined_call_operand.hbm [shape: f32[256,256], index: 1, kind: input, shape index: {}]   ;;  %s3403_s2 = inlined_call_operand.hbm [shape: f32[256,256], index: 2, kind: input, shape index: {}]   ;;  %s3404_s3 = inlined_call_operand.hbm [shape: f32[2,256], index: 3, kind: output, shape index: {}]  }
   0x1   :  { %9 = vsyncpa [#allocation6], 0 }
   0x2   :  { %11 = vsyncpa [#allocation6 + $0x1], 0 }
   0x3   :  { %12 = vsyncpa [#allocation4], 0 }
   0x4   :  { %14 = vsyncpa [#allocation4 + $0x1], 0  ;;  %s2148_s12 = smov 0   ;;  %s2150_s13 = smov 0  }
   0x5   :  { %s2152_s14 = smov 0   ;;  %s2154_s15 = smov 0  }
   0x6   :  { %s2156_s16 = smov 0   ;;  %s2158_s17 = smov 0  }
   0x7 LB: > { %s32_s18 = sadd.s32 1, %s2117_s16  ;;  %s65_s19 = sadd.s32 1, %s2109_s14  ;;  %s2121_s17 = sphi %s2158_s17, %s20_s17   ;;  %s2117_s16 = sphi %s2156_s16, %s3516_s16   ;;  %s2113_s15 = sphi %s2154_s15, %s3515_s15   ;;  %s2109_s14 = sphi %s2152_s14, %s3514_s14   ;;  %s2105_s13 = sphi %s2150_s13, %s3513_s13   ;;  %s2101_s12 = sphi %s2148_s12, %s3512_s12  }
   0x8   : > { %p34_p0 = scmp.ge.s32.totalorder %s32_s18, 2  ;;  %p72_p1 = scmp.ne.s32.totalorder %s2109_s14, %s2105_s13 }
   0x9   : > { %p73_p2 = scmp.eq.s32.totalorder %s2121_s17, 0  ;;  %p1848_p3 = scmp.ge.s32.totalorder %s2121_s17, 2 }
   0xa   : > { %s3518_s18 = smov (%p34_p0, %s32_s18), 0  ;;  %p1889_p5 = scmp.lt.s32.totalorder %s2121_s17, 2 }
   0xb   : > { %p2189_p4 = por %p73_p2, %p72_p1  ;;  %s62_s21 = ssub.s32 %s2117_s16, %s3518_s18 }
   0xc   : > { %s171_s22 = sand.u32 1, %s2121_s17   ;;  %p63_p6 = scmp.eq.s32.totalorder %s62_s21, 0 }
   0xd   : > { %s173_s23 = sand.u32 1, %s2109_s14   ;;  %s1850_s24 = sshll.u32 %s2117_s16, 3 }
   0xe   : > { %s2200_s25 = scalar_select %p63_p6, %s2109_s14, %s65_s19  }
   0xf   : > { %s1849_s26 = sshll.u32 %s173_s23, 8  ;;  %s179_s29 = scalar_lea.hbm %s3402_s1, %s1850_s24 }
  0x10   : > { %s180_s30 = sshll.u32 %s179_s29, 4  ;;  %s175_s4 = scalar_lea.vmem [#allocation5], %s1849_s26  ;;  %s181_s30 = int_to_ptr.hbm [resolvable:$true] %s180_s30 }
  0x11   : > { %s182_s5 = sshll.u32 %s175_s4, 4  ;;  %p2209_p7 = pnand %p1889_p5, %p2189_p4  ;;  %s183_s5 = int_to_ptr.vmem [resolvable:$true] %s182_s5 }
  0x12   : > { %s2213_s7 = scalar_lea.sflag [#allocation6], %s171_s22  ;;  %s2123_s8 = smov 256  }
  0x13   : > { %s2124_s9 = smov 128   ;;  %s2125_s10 = smov 8  }
  0x14   : > { %1880 = dma.hbm_to_vmem [thread:$0]  (!%p2209_p7), %s181_s30, 4096, %s183_s5, %s2213_s7, %s2123_s8, %s2124_s9, %s2125_s10  }
  0x15   : > { %s200_s20 = scalar_lea.hbm %s3403_s2, %s1850_s24  ;;  %s196_s22 = scalar_lea.vmem [#allocation7], %s1849_s26 }
  0x16   : > { %s201_s21 = sshll.u32 %s200_s20, 4  ;;  %s203_s23 = sshll.u32 %s196_s22, 4  ;;  %s202_s21 = int_to_ptr.hbm [resolvable:$true] %s201_s21  ;;  %s204_s23 = int_to_ptr.vmem [resolvable:$true] %s203_s23 }
  0x17   : > { %s1844_s27 = sadd.s32 4294967295, %s2121_s17   ;;  %s1845_s28 = sadd.s32 4294967294, %s2121_s17  }
  0x18   : > { %p78_p8 = scmp.ne.s32.totalorder %s2105_s13, %s2101_s12  ;;  %p79_p9 = scmp.eq.s32.totalorder %s1844_s27, 0 }
  0x19   : > { %p130_p10 = scmp.eq.s32.totalorder %s1844_s27, 1  ;;  %p136_p11 = scmp.eq.s32.totalorder %s1845_s28, 1 }
  0x1a   : > { %p2229_p12 = por %p79_p9, %p78_p8  ;;  %p1846_p13 = scmp.ge.s32.totalorder %s2121_s17, 1 }
  0x1b   : > { %p2237_p0 = por %p130_p10, %p72_p1  ;;  %p2241_p2 = por %p136_p11, %p78_p8 }
  0x1c   : > { %p143_p4 = scmp.lt.s32.totalorder %s2121_s17, 3  ;;  %s158_s5 = sshll.u32 %s3401_s0, 4  ;;  %s159_s5 = int_to_ptr.hbm [resolvable:$true] %s158_s5 }
  0x1d   : > { %s2126_s11 = smov [#allocation2]  }
  0x1e   : > { %p144_p5 = pnand %p1846_p13, %p143_p4  ;;  %s160_s19 = sshll.u32 %s2126_s11, 4  ;;  %s161_s19 = int_to_ptr.vmem [resolvable:$true] %s160_s19 }
  0x1f   : > { %1883 = dma.hbm_to_vmem [thread:$0]  (!%p2209_p7), %s202_s21, 4096, %s204_s23, %s2213_s7, %s2123_s8, %s2124_s9, %s2125_s10  }
  0x20   : > { %p1873_p6 = pneg %p144_p5  ;;  %215 = sbr.rel (%p144_p5) target bundleno = 395 (0x18b), region = 32 }
  0x22   : > { %p1874_p1 = pnand %p1873_p6, %p79_p9 }
  0x24   : > { %1876 = dma.hbm_to_vmem [thread:$0]  (!%p1874_p1), %s159_s5, 64, %s161_s19, [#allocation3]  }
  0x25   : > { %2088 = dma.done.wait (%p79_p9), [#allocation3], 64  }
  0x26   : > { %2090 = vsyncadd (%p79_p9), [#allocation3], 4294967232  ;;  %s222_s20 = sand.u32 1, %s1844_s27   ;;  %s2259_s22 = sand.u32 1, %s2105_s13  }
  0x27   : > { %s1855_s6 = sshll.u32 %s2259_s22, 8  ;;  %s223_s28 = scalar_lea.sflag [#allocation6], %s222_s20 }
  0x28   : > { %s2264_s7 = scalar_lea.vmem [#allocation5], %s1855_s6 }
  0x29   : > { %2092 = dma.done.wait (%p2229_p12), %s223_s28, 8192  }
  0x2a   : > { %2094 = vsyncadd (%p2229_p12), %s223_s28, 4294959104  ;;  %v281_v0 = vld [vmem:[%s2264_s7 + $0x78] sm:$0xff]  ;;  %v280_v1 = vld [vmem:[%s2264_s7 + $0x70] sm:$0xff]  ;;  %s2778_s8 = scalar_lea.vmem [#allocation7], %s1855_s6  ;;  %s1857_s9 = sshll.u32 %s2259_s22, 1 }
  0x2b   : > { %v279_v2 = vld [vmem:[%s2264_s7 + $0x68] sm:$0xff]  ;;  %v2273_v3 = vand.u32 4294901760, %v281_v0  ;;  %v2275_v4 = vand.u32 4294901760, %v280_v1  ;;  %v278_v6 = vld [vmem:[%s2264_s7 + $0x60] sm:$0xff]  ;;  %v277_v7 = vld [vmem:[%s2264_s7 + $0x58] sm:$0xff]  ;;  %s1860_s10 = sshll.u32 %s2113_s15, 1 }
  0x2c   : > { %v2277_v5 = vand.u32 4294901760, %v279_v2  ;;  %v276_v8 = vld [vmem:[%s2264_s7 + $0x50] sm:$0xff]  ;;  %v2282_v9 = vand.u32 4294901760, %v278_v6  ;;  %v2284_v10 = vand.u32 4294901760, %v277_v7  ;;  %v275_v12 = vld [vmem:[%s2264_s7 + $0x48] sm:$0xff]  ;;  %v274_v13 = vld [vmem:[%s2264_s7 + $0x40] sm:$0xff]  ;;  %s1725_s27 = scalar_lea.hbm %s3404_s3, %s1860_s10 }
  0x2d   : > { %v2286_v11 = vand.u32 4294901760, %v276_v8  ;;  %305 = vmatpush.msra.mxu0 %v2273_v3  ;;  %v2292_v14 = vsub.f32 %v281_v0, %v2273_v3  ;;  %v2295_v15 = vsub.f32 %v280_v1, %v2275_v4  ;;  %501 = vmatpush.msra.mxu3 %v2273_v3  ;;  %v2301_v17 = vand.u32 4294901760, %v275_v12  ;;  %v273_v18 = vld [vmem:[%s2264_s7 + $0x38] sm:$0xff]  ;;  %v272_v26 = vld [vmem:[%s2264_s7 + $0x30] sm:$0xff]  ;;  %v271_v34 = vld [vmem:[%s2264_s7 + $0x28] sm:$0xff]  ;;  %s264_s29 = scalar_lea.vmem [#allocation8], %s1857_s9 }
  0x2e   : > { %v2299_v16 = vsub.f32 %v279_v2, %v2277_v5  ;;  %v2305_v19 = vsub.f32 %v278_v6, %v2282_v9  ;;  %v2308_v20 = vsub.f32 %v277_v7, %v2284_v10  ;;  %v2318_v25 = vand.u32 4294901760, %v274_v13  ;;  %v270_v42 = vld [vmem:[%s2264_s7 + $0x20] sm:$0xff]  ;;  %v269_v48 = vld [vmem:[%s2264_s7 + $0x18] sm:$0xff]  ;;  %v268_v54 = vld [vmem:[%s2264_s7 + $0x10] sm:$0xff]  ;;  %s1727_s30 = sshll.u32 %s264_s29, 4  ;;  %s1729_s4 = sshll.u32 %s1725_s27, 4  ;;  %s1728_s30 = int_to_ptr.vmem [resolvable:$true] %s1727_s30  ;;  %s1730_s4 = int_to_ptr.hbm [resolvable:$true] %s1729_s4 }
  0x2f   : > { %v2311_v21 = vsub.f32 %v276_v8, %v2286_v11  ;;  %307 = vmatpush.msra.mxu0 %v2275_v4  ;;  %448 = vmatpush.msra.mxu2 %v2292_v14  ;;  %v347_v22 = vand.u32 4294901760, %v2292_v14  ;;  %v3419_v23 = vand.u32 4294901760, %v2295_v15  ;;  %v2323_v28 = vand.u32 4294901760, %v273_v18  ;;  %v2384_v55 = vld [vmem:[#allocation2] sm:$0xf]  ;;  %v267_v62 = vld [vmem:[%s2264_s7 + $0x8] sm:$0xff] }
  0x30   : > { %v3418_v24 = vand.u32 4294901760, %v2299_v16  ;;  %503 = vmatpush.msra.mxu3 %v2275_v4  ;;  %v3415_v27 = vand.u32 4294901760, %v2305_v19  ;;  %v2326_v29 = vsub.f32 %v275_v12, %v2301_v17  ;;  %v3414_v33 = vand.u32 4294901760, %v2308_v20  ;;  %v297_v60 = vld [vmem:[%s2264_s7 + $0xf8] sm:$0xff]  ;;  %299 = vst [vmem:[#allocation1] ss:$4 sm:$0xff] %v2384_v55 }
  0x31   : > { %309 = vmatpush.msra.mxu0 %v2277_v5  ;;  %451 = vmatpush.msra.mxu2 %v2295_v15  ;;  %v348_v30 = vsub.f32 %v2292_v14, %v347_v22  ;;  %v354_v31 = vsub.f32 %v2295_v15, %v3419_v23  ;;  %v2342_v35 = vand.u32 4294901760, %v272_v26  ;;  %v3412_v36 = vand.u32 4294901760, %v2311_v21  ;;  %v266_v6 = vld [vmem:[%s2264_s7] sm:$0xff]  ;;  %v296_v7 = vld [vmem:[%s2264_s7 + $0xf0] sm:$0xff]  ;;  %s1713_s15 = scalar_lea.sflag [#allocation4], %s2259_s22  ;;  %s2049_s5 = sshra.s32 %s1730_s4, 4  ;;  %s2050_s5 = int_to_ptr.hbm [resolvable:$true] %s2049_s5 }
  0x32   : > { %v360_v32 = vsub.f32 %v2299_v16, %v3418_v24  ;;  %505 = vmatpush.msra.mxu3 %v2277_v5  ;;  %v366_v39 = vsub.f32 %v2305_v19, %v3415_v27  ;;  %v2351_v40 = vsub.f32 %v274_v13, %v2318_v25  ;;  %v2354_v41 = vand.u32 4294901760, %v271_v34  ;;  %s2051_s11 = scalar_lea.hbm %s2050_s5, 2  ;;  %s2055_s6 = scalar_lea.hbm %s3404_s3, 4 }
  0x33   : > { %311 = vmatpush.msra.mxu0 %v2282_v9  ;;  %v349_v37 = vand.u32 4294901760, %v348_v30  ;;  %454 = vmatpush.msra.mxu2 %v2299_v16  ;;  %v355_v38 = vand.u32 4294901760, %v354_v31  ;;  %v372_v44 = vsub.f32 %v2308_v20, %v3414_v33  ;;  %v3411_v45 = vand.u32 4294901760, %v2326_v29  ;;  %p2052_p7 = scmp.ne.s32.totalorder %s2050_s5, %s2051_s11  ;;  %p2056_p10 = scmp.lt.s32.totalorder %s2050_s5, %s3404_s3 }
  0x34   : > { %507 = vmatpush.msra.mxu3 %v2282_v9  ;;  %v361_v43 = vand.u32 4294901760, %v360_v32  ;;  %v2363_v46 = vsub.f32 %v273_v18, %v2323_v28  ;;  %v378_v47 = vsub.f32 %v2311_v21, %v3412_v36  ;;  %v367_v49 = vand.u32 4294901760, %v366_v39  ;;  %v290_v36 = vld [vmem:[%s2264_s7 + $0xc0] sm:$0xff]  ;;  %p2057_p11 = scmp.lt.s32.totalorder %s2055_s6, %s2051_s11 }
  0x35   : > { %313 = vmatpush.msra.mxu0 %v2284_v10  ;;  %350 = vmatpush.msra.mxu1 %v349_v37  ;;  %v2372_v50 = vand.u32 4294901760, %v270_v42  ;;  %v3410_v51 = vand.u32 4294901760, %v2351_v40  ;;  %v2376_v52 = vsub.f32 %v272_v26, %v2342_v35  ;;  %v2381_v53 = vsub.f32 %v271_v34, %v2354_v41  ;;  %v295_v34 = vld [vmem:[%s2264_s7 + $0xe8] sm:$0xff]  ;;  %p2053_p8 = pnand %p2052_p7, %p2237_p0 }
  0x36   : > { %457 = vmatpush.msra.mxu2 %v2305_v19  ;;  %509 = vmatpush.msra.mxu3 %v2284_v10  ;;  %v373_v56 = vand.u32 4294901760, %v372_v44  ;;  %v384_v57 = vsub.f32 %v2326_v29, %v3411_v45  ;;  %v2390_v58 = vand.u32 4294901760, %v269_v48  ;;  %v3408_v59 = vand.u32 4294901760, %v2363_v46  ;;  %p2058_p12 = por %p2057_p11, %p2056_p10 }
  0x37   : > { %315 = vmatpush.msra.mxu0 %v2286_v11  ;;  %356 = vmatpush.msra.mxu1 %v355_v38  ;;  %v379_v61 = vand.u32 4294901760, %v378_v47  ;;  %v390_v63 = vsub.f32 %v2351_v40, %v3410_v51  ;;  %v2402_v0 = vand.u32 4294901760, %v268_v54  ;;  %v3407_v1 = vand.u32 4294901760, %v2376_v52  ;;  %v294_v47 = vld [vmem:[%s2264_s7 + $0xe0] sm:$0xff]  ;;  %p2054_p9 = pneg %p2053_p8 }
  0x38   : > { %460 = vmatpush.msra.mxu2 %v2308_v20  ;;  %511 = vmatpush.msra.mxu3 %v2286_v11  ;;  %v2406_v2 = vsub.f32 %v270_v42, %v2372_v50  ;;  %v3405_v8 = vand.u32 4294901760, %v2381_v53  ;;  %v2413_v12 = vand.u32 4294901760, %v297_v60  ;;  %v385_v13 = vand.u32 4294901760, %v384_v57 }
  0x39   : > { %317 = vmatpush.msra.mxu0 %v2301_v17  ;;  %362 = vmatpush.msra.mxu1 %v361_v43  ;;  %v396_v18 = vsub.f32 %v2363_v46, %v3408_v59  ;;  %v2419_v26 = vand.u32 4294901760, %v267_v62  ;;  %v2422_v30 = vsub.f32 %v269_v48, %v2390_v58  ;;  %v2426_v31 = vand.u32 4294901760, %v266_v6  ;;  %p2059_p13 = pnand %p2058_p12, %p2054_p9 }
  0x3a   : > { %463 = vmatpush.msra.mxu2 %v2311_v21  ;;  %513 = vmatpush.msra.mxu3 %v2301_v17  ;;  %3454 = vst [vmem:[#allocation12_spill] sm:$0xff] %v2413_v12  ;;  %v2428_v32 = vand.u32 4294901760, %v296_v7  ;;  %v391_v37 = vand.u32 4294901760, %v390_v63  ;;  %v402_v38 = vsub.f32 %v2376_v52, %v3407_v1  ;;  %v3406_v39 = vand.u32 4294901760, %v2406_v2 }
  0x3b   : > { %319 = vmatpush.msra.mxu0 %v2318_v25  ;;  %368 = vmatpush.msra.mxu1 %v367_v49  ;;  %3455 = vst [vmem:[#allocation13_spill] sm:$0xff] %v2419_v26  ;;  %v2437_v42 = vsub.f32 %v268_v54, %v2402_v0  ;;  %v408_v43 = vsub.f32 %v2381_v53, %v3405_v8  ;;  %v397_v48 = vand.u32 4294901760, %v396_v18  ;;  %v3409_v49 = vand.u32 4294901760, %v2422_v30  ;;  %v292_v8 = vld [vmem:[%s2264_s7 + $0xd0] sm:$0xff] }
  0x3c   : > { %466 = vmatpush.msra.mxu2 %v2326_v29  ;;  %515 = vmatpush.msra.mxu3 %v2318_v25  ;;  %3456 = vst [vmem:[#allocation14_spill] sm:$0xff] %v2426_v31  ;;  %v2445_v44 = vsub.f32 %v297_v60, %v2413_v12  ;;  %v2451_v54 = vsub.f32 %v267_v62, %v2419_v26  ;;  %v403_v62 = vand.u32 4294901760, %v402_v38  ;;  %v2469_v18 = vand.u32 4294901760, %v294_v47 }
  0x3d   : > { %321 = vmatpush.msra.mxu0 %v2323_v28  ;;  %374 = vmatpush.msra.mxu1 %v373_v56  ;;  %v2453_v56 = vand.u32 4294901760, %v295_v34  ;;  %v2458_v57 = vsub.f32 %v266_v6, %v2426_v31  ;;  %v2461_v60 = vsub.f32 %v296_v7, %v2428_v32  ;;  %v414_v63 = vsub.f32 %v2406_v2, %v3406_v39 }
  0x3e   : > { %469 = vmatpush.msra.mxu2 %v2351_v40  ;;  %517 = vmatpush.msra.mxu3 %v2323_v28  ;;  %v409_v6 = vand.u32 4294901760, %v408_v43  ;;  %v3416_v7 = vand.u32 4294901760, %v2445_v44  ;;  %v3417_v38 = vand.u32 4294901760, %v2451_v54  ;;  %v291_v43 = vld [vmem:[%s2264_s7 + $0xc8] sm:$0xff]  ;;  %v2495_v51 = vsub.f32 %v294_v47, %v2469_v18 }
  0x3f   : > { %323 = vmatpush.msra.mxu0 %v2342_v35  ;;  %380 = vmatpush.msra.mxu1 %v379_v61  ;;  %v293_v61 = vld [vmem:[%s2264_s7 + $0xd8] sm:$0xff]  ;;  %v2481_v39 = vsub.f32 %v295_v34, %v2453_v56  ;;  %v3421_v59 = vand.u32 4294901760, %v2458_v57  ;;  %v2497_v45 = vand.u32 4294901760, %v292_v8 }
  0x40   : > { %472 = vmatpush.msra.mxu2 %v2363_v46  ;;  %519 = vmatpush.msra.mxu3 %v2342_v35  ;;  %v2483_v1 = vand.u32 4294901760, %v293_v61  ;;  %v432_v47 = vsub.f32 %v2451_v54, %v3417_v38  ;;  %v3459_v14 = vand.u32 4294901760, %v2495_v51 }
  0x41   : > { %325 = vmatpush.msra.mxu0 %v2354_v41  ;;  %386 = vmatpush.msra.mxu1 %v385_v13  ;;  %v3413_v13 = vand.u32 4294901760, %v2437_v42  ;;  %v2529_v23 = vsub.f32 %v292_v8, %v2497_v45  ;;  %v3457_v8 = vand.u32 4294901760, %v2481_v39 }
  0x42   : > { %475 = vmatpush.msra.mxu2 %v2376_v52  ;;  %521 = vmatpush.msra.mxu3 %v2354_v41  ;;  %v2513_v27 = vsub.f32 %v293_v61, %v2483_v1  ;;  %v438_v61 = vsub.f32 %v2458_v57, %v3421_v59  ;;  %v433_v59 = vand.u32 4294901760, %v432_v47  ;;  %v287_v47 = vld [vmem:[%s2264_s7 + $0xa8] sm:$0xff] }
  0x43   : > { %327 = vmatpush.msra.mxu0 %v2372_v50  ;;  %392 = vmatpush.msra.mxu1 %v391_v37  ;;  %v420_v37 = vsub.f32 %v2422_v30, %v3409_v49  ;;  %v415_v49 = vand.u32 4294901760, %v414_v63  ;;  %v426_v34 = vsub.f32 %v2437_v42, %v3413_v13  ;;  %v2505_v63 = vand.u32 4294901760, %v291_v43 }
  0x44   : > { %478 = vmatpush.msra.mxu2 %v2381_v53  ;;  %523 = vmatpush.msra.mxu3 %v2372_v50  ;;  %v701_v24 = vsub.f32 %v2481_v39, %v3457_v8  ;;  %v439_v8 = vand.u32 4294901760, %v438_v61  ;;  %v3461_v61 = vand.u32 4294901760, %v2513_v27 }
  0x45   : > { %329 = vmatpush.msra.mxu0 %v2390_v58  ;;  %398 = vmatpush.msra.mxu1 %v397_v48  ;;  %v3420_v48 = vand.u32 4294901760, %v2461_v60  ;;  %v421_v13 = vand.u32 4294901760, %v420_v37  ;;  %v289_v37 = vld [vmem:[%s2264_s7 + $0xb8] sm:$0xff]  ;;  %v427_v38 = vand.u32 4294901760, %v426_v34  ;;  %v2535_v33 = vsub.f32 %v291_v43, %v2505_v63 }
  0x46   : > { %481 = vmatpush.msra.mxu2 %v2406_v2  ;;  %525 = vmatpush.msra.mxu3 %v2390_v58  ;;  %v2538_v34 = vld.sshfl [vmem:[#allocation1] sm:$0xff pattern:$0x73625140]  ;;  %v3458_v43 = vand.u32 4294901760, %v2295_v15  ;;  %v2575_v15 = vand.u32 4294901760, %v287_v47 }
  0x47   : > { %331 = vmatpush.msra.mxu0 %v2402_v0  ;;  %404 = vmatpush.msra.mxu1 %v403_v62  ;;  %v689_v62 = vsub.f32 %v2445_v44, %v3416_v7  ;;  %v695_v7 = vsub.f32 %v2461_v60, %v3420_v48 }
  0x48   : > { %484 = vmatpush.msra.mxu2 %v2422_v30  ;;  %527 = vmatpush.msra.mxu3 %v2402_v0 }
  0x49   : > { %333 = vmatpush.msra.mxu0 %v2419_v26  ;;  %410 = vmatpush.msra.mxu1 %v409_v6  ;;  %v2520_v6 = vand.u32 4294901760, %v290_v36  ;;  %v690_v48 = vand.u32 4294901760, %v689_v62 }
  0x4a   : > { %487 = vmatpush.msra.mxu2 %v2437_v42  ;;  %529 = vmatpush.msra.mxu3 %v2419_v26  ;;  %v2547_v26 = vld.sshfl [vmem:[#allocation1 + $0x8] sm:$0xff pattern:$0x73625140] }
  0x4b   : > { %335 = vmatpush.msra.mxu0 %v2426_v31  ;;  %416 = vmatpush.msra.mxu1 %v415_v49  ;;  %v288_v49 = vld [vmem:[%s2264_s7 + $0xb0] sm:$0xff]  ;;  %v2553_v62 = vsub.f32 %v290_v36, %v2520_v6  ;;  %1018 = vst [vmem:[#allocation1] ss:$4 sm:$0xff] %v2384_v55  ;;  %v286_v55 = vld [vmem:[%s2264_s7 + $0xa0] sm:$0xff] }
  0x4c   : > { %490 = vmatpush.msra.mxu2 %v2451_v54  ;;  %531 = vmatpush.msra.mxu3 %v2426_v31  ;;  %v707_v31 = vsub.f32 %v2495_v51, %v3459_v14  ;;  %v713_v14 = vsub.f32 %v2513_v27, %v3461_v61  ;;  %v2588_v36 = vand.u32 4294901760, %v286_v55 }
  0x4d   : > { %542 = vmatpush.msrb.mxu0 %v347_v22  ;;  %422 = vmatpush.msra.mxu1 %v421_v13  ;;  %v2545_v22 = vand.u32 4294901760, %v289_v37  ;;  %v696_v13 = vand.u32 4294901760, %v695_v7  ;;  %v3460_v7 = vand.u32 4294901760, %v2299_v16  ;;  %v3462_v16 = vand.u32 4294901760, %v2305_v19 }
  0x4e   : > { %493 = vmatpush.msra.mxu2 %v2458_v57  ;;  %691 = vmatpush.msrb.mxu3 %v690_v48  ;;  %v3426_v48 = vand.u32 4294901760, %v2553_v62  ;;  %v3464_v19 = vand.u32 4294901760, %v2308_v20  ;;  %v3466_v20 = vand.u32 4294901760, %v2311_v21  ;;  %v3467_v21 = vand.u32 4294901760, %v2326_v29 }
  0x4f   : > { %546 = vmatpush.msrb.mxu0 %v3458_v43  ;;  %428 = vmatpush.msra.mxu1 %v427_v38  ;;  %v2562_v43 = vand.u32 4294901760, %v288_v49  ;;  %v702_v38 = vand.u32 4294901760, %v701_v24  ;;  %v708_v24 = vand.u32 4294901760, %v707_v31  ;;  %v714_v31 = vand.u32 4294901760, %v713_v14 }
  0x50   : > { %646 = vmatpush.msrb.mxu2 %v2413_v12  ;;  %v2573_v12 = vsub.f32 %v289_v37, %v2545_v22  ;;  %697 = vmatpush.msrb.mxu3 %v696_v13  ;;  %v3465_v13 = vand.u32 4294901760, %v2535_v33  ;;  %v3468_v29 = vand.u32 4294901760, %v2351_v40  ;;  %v282_v40 = vld [vmem:[%s2264_s7 + $0x80] sm:$0xff] }
  0x51   : > { %550 = vmatpush.msrb.mxu0 %v3460_v7  ;;  %434 = vmatpush.msra.mxu1 %v433_v59  ;;  %v285_v7 = vld [vmem:[%s2264_s7 + $0x98] sm:$0xff]  ;;  %v3463_v59 = vand.u32 4294901760, %v2529_v23  ;;  %v2586_v37 = vsub.f32 %v288_v49, %v2562_v43  ;;  %v2599_v49 = vsub.f32 %v287_v47, %v2575_v15  ;;  %v2613_v47 = vsub.f32 %v286_v55, %v2588_v36 }
  0x52   : > { %648 = vmatpush.msrb.mxu2 %v2428_v32  ;;  %703 = vmatpush.msrb.mxu3 %v702_v38 }
  0x53   : > { %554 = vmatpush.msrb.mxu0 %v3462_v16  ;;  %440 = vmatpush.msra.mxu1 %v439_v8  ;;  %v719_v61 = vsub.f32 %v2529_v23, %v3463_v59  ;;  %v725_v8 = vsub.f32 %v2535_v33, %v3465_v13  ;;  %v736_v16 = vand.u32 4294901760, %v2573_v12  ;;  %v2601_v59 = vand.u32 4294901760, %v285_v7 }
  0x54   : > { %650 = vmatpush.msrb.mxu2 %v2453_v56  ;;  %709 = vmatpush.msrb.mxu3 %v708_v24  ;;  %v3427_v14 = vand.u32 4294901760, %v2586_v37  ;;  %v2616_v13 = vand.u32 4294901760, %v2538_v34  ;;  %v748_v55 = vand.u32 4294901760, %v2599_v49 }
  0x55   : > { %558 = vmatpush.msrb.mxu0 %v3464_v19  ;;  %609 = vmatpush.msrb.mxu1 %v2273_v3  ;;  %v731_v3 = vsub.f32 %v2553_v62, %v3426_v48  ;;  %v284_v19 = vld [vmem:[%s2264_s7 + $0x90] sm:$0xff]  ;;  %v720_v38 = vand.u32 4294901760, %v719_v61  ;;  %v737_v24 = vsub.f32 %v2573_v12, %v736_v16  ;;  %v2630_v48 = vsub.f32 %v285_v7, %v2601_v59 }
  0x56   : > { %652 = vmatpush.msrb.mxu2 %v2469_v18  ;;  %715 = vmatpush.msrb.mxu3 %v714_v31  ;;  %v2627_v61 = vand.u32 4294901760, %v284_v19  ;;  %v754_v31 = vand.u32 4294901760, %v2613_v47 }
  0x57   : > { %562 = vmatpush.msrb.mxu0 %v3466_v20  ;;  %611 = vmatpush.msrb.mxu1 %v2275_v4  ;;  %v726_v4 = vand.u32 4294901760, %v725_v8  ;;  %v283_v20 = vld [vmem:[%s2264_s7 + $0x88] sm:$0xff]  ;;  %v743_v8 = vsub.f32 %v2586_v37, %v3427_v14  ;;  %v3470_v14 = vand.u32 4294901760, %v2376_v52  ;;  %v3471_v52 = vand.u32 4294901760, %v2381_v53 }
  0x58   : > { %654 = vmatpush.msrb.mxu2 %v2483_v1  ;;  %721 = vmatpush.msrb.mxu3 %v720_v38  ;;  %v2644_v7 = vand.u32 4294901760, %v283_v20  ;;  %v760_v38 = vand.u32 4294901760, %v2630_v48 }
  0x59   : > { %566 = vmatpush.msrb.mxu0 %v3467_v21  ;;  %613 = vmatpush.msrb.mxu1 %v2277_v5  ;;  %v732_v5 = vand.u32 4294901760, %v731_v3  ;;  %v2642_v21 = vsub.f32 %v2538_v34, %v2616_v13  ;;  %v749_v3 = vsub.f32 %v2599_v49, %v748_v55  ;;  %v2656_v34 = vsub.f32 %v284_v19, %v2627_v61 }
  0x5a   : > { %656 = vmatpush.msrb.mxu2 %v2497_v45  ;;  %727 = vmatpush.msrb.mxu3 %v726_v4  ;;  %v755_v4 = vsub.f32 %v2613_v47, %v754_v31  ;;  %v2669_v19 = vsub.f32 %v283_v20, %v2644_v7 }
  0x5b   : > { %570 = vmatpush.msrb.mxu0 %v3468_v29  ;;  %615 = vmatpush.msrb.mxu1 %v2282_v9  ;;  %v3469_v29 = vand.u32 4294901760, %v2363_v46  ;;  %v738_v9 = vand.u32 4294901760, %v737_v24  ;;  %v2661_v46 = vand.u32 4294901760, %v282_v40  ;;  %v338_v24 = vand.u32 4294901760, %v2642_v21 }
  0x5c   : > { %658 = vmatpush.msrb.mxu2 %v2505_v63  ;;  %733 = vmatpush.msrb.mxu3 %v732_v5  ;;  %v766_v5 = vand.u32 4294901760, %v2656_v34 }
  0x5d   : > { %574 = vmatpush.msrb.mxu0 %v3469_v29  ;;  %617 = vmatpush.msrb.mxu1 %v2284_v10  ;;  %v744_v10 = vand.u32 4294901760, %v743_v8  ;;  %v3472_v8 = vand.u32 4294901760, %v2406_v2  ;;  %v2683_v53 = vsub.f32 %v282_v40, %v2661_v46  ;;  %v339_v20 = vsub.f32 %v2642_v21, %v338_v24 }
  0x5e   : > { %660 = vmatpush.msrb.mxu2 %v2520_v6  ;;  %739 = vmatpush.msrb.mxu3 %v738_v9  ;;  %v772_v29 = vand.u32 4294901760, %v2669_v19  ;;  %v2689_v9 = vand.u32 4294901760, %v2547_v26  ;;  %v767_v2 = vsub.f32 %v2656_v34, %v766_v5  ;;  %v3474_v40 = vand.u32 4294901760, %v2437_v42 }
  0x5f   : > { %578 = vmatpush.msrb.mxu0 %v3470_v14  ;;  %619 = vmatpush.msrb.mxu1 %v2286_v11  ;;  %v750_v11 = vand.u32 4294901760, %v749_v3  ;;  %v761_v14 = vsub.f32 %v2630_v48, %v760_v38  ;;  %v3473_v3 = vand.u32 4294901760, %v2422_v30  ;;  %v340_v30 = vand.u32 4294901760, %v339_v20 }
  0x60   : > { %662 = vmatpush.msrb.mxu2 %v2545_v22  ;;  %745 = vmatpush.msrb.mxu3 %v744_v10  ;;  %v778_v10 = vand.u32 4294901760, %v2683_v53  ;;  %v3476_v42 = vand.u32 4294901760, %v2458_v57  ;;  %v3478_v57 = vld [vmem:[#allocation13_spill] sm:$0xff] }
  0x61   : > { %582 = vmatpush.msrb.mxu0 %v3471_v52  ;;  %621 = vmatpush.msrb.mxu1 %v2301_v17  ;;  %v756_v17 = vand.u32 4294901760, %v755_v4  ;;  %v2708_v4 = vsub.f32 %v2547_v26, %v2689_v9  ;;  %v3475_v52 = vand.u32 4294901760, %v2451_v54 }
  0x62   : > { %664 = vmatpush.msrb.mxu2 %v2562_v43  ;;  %751 = vmatpush.msrb.mxu3 %v750_v11  ;;  %v779_v11 = vsub.f32 %v2683_v53, %v778_v10 }
  0x63   : > { %586 = vmatpush.msrb.mxu0 %v3472_v8  ;;  %623 = vmatpush.msrb.mxu1 %v2318_v25  ;;  %v762_v25 = vand.u32 4294901760, %v761_v14  ;;  %v679_v54 = vand.u32 4294901760, %v2708_v4  ;;  %v3480_v14 = vld [vmem:[#allocation12_spill] sm:$0xff]  ;;  %v3481_v8 = vld [vmem:[#allocation14_spill] sm:$0xff] }
  0x64   : > { %666 = vmatpush.msrb.mxu2 %v2575_v15  ;;  %757 = vmatpush.msrb.mxu3 %v756_v17  ;;  %v992_v17 = vld [vmem:[%s2778_s8 + $0x30] sm:$0xff] }
  0x65   : > { %590 = vmatpush.msrb.mxu0 %v3473_v3  ;;  %625 = vmatpush.msrb.mxu1 %v2323_v28  ;;  %v773_v28 = vsub.f32 %v2669_v19, %v772_v29 }
  0x66   : > { %668 = vmatpush.msrb.mxu2 %v2588_v36  ;;  %763 = vmatpush.msrb.mxu3 %v762_v25 }
  0x67   : > { %594 = vmatpush.msrb.mxu0 %v3474_v40  ;;  %627 = vmatpush.msrb.mxu1 %v2342_v35  ;;  %v768_v35 = vand.u32 4294901760, %v767_v2  ;;  %v774_v26 = vand.u32 4294901760, %v773_v28 }
  0x68   : > { %670 = vmatpush.msrb.mxu2 %v2601_v59  ;;  %341 = vmatmul.f32.vlgmr.msra.gmra.mxu0 %v340_v30 }
  0x69   : > { %598 = vmatpush.msrb.mxu0 %v3475_v52  ;;  %629 = vmatpush.msrb.mxu1 %v2354_v41  ;;  %v780_v41 = vand.u32 4294901760, %v779_v11  ;;  %v990_v52 = vld [vmem:[%s2778_s8 + $0x20] sm:$0xff] }
  0x6a   : > { %672 = vmatpush.msrb.mxu2 %v2627_v61  ;;  %769 = vmatpush.msrb.mxu3 %v768_v35 }
  0x6b   : > { %602 = vmatpush.msrb.mxu0 %v3476_v42  ;;  %631 = vmatpush.msrb.mxu1 %v2372_v50  ;;  %v680_v50 = vsub.f32 %v2708_v4, %v679_v54 }
  0x6c   : > { %674 = vmatpush.msrb.mxu2 %v2644_v7  ;;  %775 = vmatpush.msrb.mxu3 %v774_v26 }
  0x6d   : > { %789 = vmatpush.msra.mxu0 %v2445_v44  ;;  %633 = vmatpush.msrb.mxu1 %v2390_v58  ;;  %v3477_v58 = vand.u32 4294901760, %v2445_v44  ;;  %v3482_v44 = vand.u32 4294901760, %v2481_v39 }
  0x6e   : > { %496 = vmatmul.f32.vlgmr.msra.gmra.mxu2 %v2642_v21  ;;  %535 = vmatmul.f32.vlgmr.msra.gmra.mxu3 %v338_v24  ;;  %v681_v21 = vand.u32 4294901760, %v680_v50  ;;  %v993_v24 = vld [vmem:[%s2778_s8 + $0x38] sm:$0xff] }
  0x6f   : > { %792 = vmatpush.msra.mxu0 %v2461_v60  ;;  %635 = vmatpush.msrb.mxu1 %v2402_v0  ;;  %v3479_v0 = vand.u32 4294901760, %v2461_v60  ;;  %v3483_v60 = vand.u32 4294901760, %v2495_v51  ;;  %v2878_v20 = vand.u32 4294901760, %v993_v24 }
  0x70   : > { %676 = vmatpush.msrb.mxu2 %v2661_v46  ;;  %781 = vmatpush.msrb.mxu3 %v780_v41 }
  0x71   : > { %795 = vmatpush.msra.mxu0 %v2481_v39  ;;  %637 = vmatpush.msrb.mxu1 %v3478_v57  ;;  %v3484_v39 = vand.u32 4294901760, %v2513_v27 }
  0x72   : > { %883 = vmatpush.msra.mxu2 %v3477_v58  ;;  %442 = vmatmul.f32.vlgmr.msra.gmra.mxu1 %v2616_v13  ;;  %v2927_v58 = vand.u32 4294901760, %v990_v52 }
  0x73   : > { %798 = vmatpush.msra.mxu0 %v2495_v51  ;;  %950 = vmatpush.msra.mxu3 %v3480_v14  ;;  %v3485_v51 = vand.u32 4294901760, %v2529_v23 }
  0x74   : > { %887 = vmatpush.msra.mxu2 %v3479_v0  ;;  %639 = vmatpush.msrb.mxu1 %v3481_v8 }
  0x75   : > { %801 = vmatpush.msra.mxu0 %v2513_v27  ;;  %952 = vmatpush.msra.mxu3 %v2428_v32  ;;  %v3486_v27 = vand.u32 4294901760, %v2535_v33 }
  0x76   : > { %842 = vmatpush.msra.mxu1 %v3480_v14  ;;  %891 = vmatpush.msra.mxu2 %v3482_v44 }
  0x77   : > { %682 = vmatmul.f32.vlgmr.msrb.gmra.mxu2 %v681_v21  ;;  %804 = vmatpush.msra.mxu0 %v2529_v23  ;;  %v1001_v23 = vld [vmem:[%s2778_s8 + $0x78] sm:$0xff]  ;;  %v988_v21 = vld [vmem:[%s2778_s8 + $0x10] sm:$0xff] }
  0x78   : > { %844 = vmatpush.msra.mxu1 %v2428_v32  ;;  %895 = vmatpush.msra.mxu2 %v3483_v60  ;;  %v3487_v32 = vand.u32 4294901760, %v2553_v62 }
  0x79   : > { %954 = vmatpush.msra.mxu3 %v2453_v56  ;;  %604 = vmatmul.f32.vlgmr.msrb.gmra.mxu0 %v2616_v13 }
  0x7a   : > { %783 = vmatmul.f32.vlgmr.msrb.gmra.mxu3 %v2689_v9  ;;  %807 = vmatpush.msra.mxu0 %v2535_v33  ;;  %v1000_v33 = vld [vmem:[%s2778_s8 + $0x70] sm:$0xff] }
  0x7b   : > { %846 = vmatpush.msra.mxu1 %v2453_v56  ;;  %899 = vmatpush.msra.mxu2 %v3484_v39  ;;  %v2798_v56 = vand.u32 4294901760, %v1000_v33 }
  0x7c   : > { %956 = vmatpush.msra.mxu3 %v2469_v18  ;;  %641 = vmatmul.f32.vlgmr.msrb.gmra.mxu1 %v2616_v13 }
  0x7d   : > { %810 = vmatpush.msra.mxu0 %v2553_v62  ;;  %848 = vmatpush.msra.mxu1 %v2469_v18  ;;  %v998_v18 = vld [vmem:[%s2778_s8 + $0x60] sm:$0xff] }
  0x7e   : > { %903 = vmatpush.msra.mxu2 %v3485_v51  ;;  %958 = vmatpush.msra.mxu3 %v2483_v1  ;;  %v2817_v62 = vand.u32 4294901760, %v998_v18  ;;  %v987_v51 = vld [vmem:[%s2778_s8 + $0x8] sm:$0xff] }
  0x7f   : > { %813 = vmatpush.msra.mxu0 %v2573_v12  ;;  %850 = vmatpush.msra.mxu1 %v2483_v1  ;;  %v2790_v1 = vand.u32 4294901760, %v1001_v23  ;;  %v999_v12 = vld [vmem:[%s2778_s8 + $0x68] sm:$0xff] }
  0x80   : > { %907 = vmatpush.msra.mxu2 %v3486_v27  ;;  %960 = vmatpush.msra.mxu3 %v2497_v45  ;;  %v2844_v13 = vsub.f32 %v998_v18, %v2817_v62  ;;  %v986_v18 = vld [vmem:[%s2778_s8] sm:$0xff] }
  0x81   : > { %816 = vmatpush.msra.mxu0 %v2586_v37  ;;  %852 = vmatpush.msra.mxu1 %v2497_v45  ;;  %v3488_v45 = vand.u32 4294901760, %v2586_v37  ;;  %v996_v37 = vld [vmem:[%s2778_s8 + $0x50] sm:$0xff] }
  0x82   : > { %911 = vmatpush.msra.mxu2 %v3487_v32  ;;  %962 = vmatpush.msra.mxu3 %v2505_v63 }
  0x83   : > { %819 = vmatpush.msra.mxu0 %v2599_v49  ;;  %854 = vmatpush.msra.mxu1 %v2505_v63  ;;  %v2806_v63 = vand.u32 4294901760, %v999_v12  ;;  %v2840_v49 = vand.u32 4294901760, %v996_v37 }
  0x84   : > { %915 = vmatpush.msra.mxu2 %v736_v16  ;;  %964 = vmatpush.msra.mxu3 %v2520_v6 }
  0x85   : > { %822 = vmatpush.msra.mxu0 %v2613_v47  ;;  %856 = vmatpush.msra.mxu1 %v2520_v6  ;;  %v2809_v6 = vsub.f32 %v1001_v23, %v2790_v1  ;;  %v2832_v16 = vsub.f32 %v999_v12, %v2806_v63  ;;  %v2951_v23 = vand.u32 4294901760, %v988_v21 }
  0x86   : > { %919 = vmatpush.msra.mxu2 %v3488_v45  ;;  %966 = vmatpush.msra.mxu3 %v2545_v22  ;;  %v1017_v45 = vld [vmem:[%s2778_s8 + $0xf8] sm:$0xff] }
  0x87   : > { %825 = vmatpush.msra.mxu0 %v2630_v48  ;;  %858 = vmatpush.msra.mxu1 %v2545_v22  ;;  %v997_v22 = vld [vmem:[%s2778_s8 + $0x58] sm:$0xff]  ;;  %v1066_v48 = vand.u32 4294901760, %v2809_v6 }
  0x88   : > { %923 = vmatpush.msra.mxu2 %v748_v55  ;;  %968 = vmatpush.msra.mxu3 %v2562_v43  ;;  %v994_v55 = vld [vmem:[%s2778_s8 + $0x40] sm:$0xff] }
  0x89   : > { %828 = vmatpush.msra.mxu0 %v2656_v34  ;;  %860 = vmatpush.msra.mxu1 %v2562_v43  ;;  %v2820_v43 = vsub.f32 %v1000_v33, %v2798_v56  ;;  %v2954_v33 = vsub.f32 %v990_v52, %v2927_v58 }
  0x8a   : > { %927 = vmatpush.msra.mxu2 %v754_v31  ;;  %970 = vmatpush.msra.mxu3 %v2575_v15 }
  0x8b   : > { %831 = vmatpush.msra.mxu0 %v2669_v19  ;;  %862 = vmatpush.msra.mxu1 %v2575_v15  ;;  %v2828_v15 = vand.u32 4294901760, %v997_v22  ;;  %v1072_v47 = vand.u32 4294901760, %v2820_v43  ;;  %v2869_v19 = vand.u32 4294901760, %v994_v55 }
  0x8c   : > { %931 = vmatpush.msra.mxu2 %v760_v38  ;;  %972 = vmatpush.msra.mxu3 %v2588_v36  ;;  %v1078_v38 = vand.u32 4294901760, %v2832_v16 }
  0x8d   : > { %834 = vmatpush.msra.mxu0 %v2683_v53  ;;  %864 = vmatpush.msra.mxu1 %v2588_v36  ;;  %v995_v36 = vld [vmem:[%s2778_s8 + $0x48] sm:$0xff]  ;;  %v2859_v34 = vsub.f32 %v997_v22, %v2828_v15  ;;  %v2873_v53 = vsub.f32 %v996_v37, %v2840_v49  ;;  %v2901_v28 = vsub.f32 %v994_v55, %v2869_v19  ;;  %v2964_v37 = vand.u32 4294901760, %v987_v51 }
  0x8e   : > { %935 = vmatpush.msra.mxu2 %v766_v5  ;;  %974 = vmatpush.msra.mxu3 %v2601_v59  ;;  %v2855_v31 = vand.u32 4294901760, %v995_v36  ;;  %v1084_v5 = vand.u32 4294901760, %v2844_v13  ;;  %v1079_v3 = vsub.f32 %v2832_v16, %v1078_v38 }
  0x8f   : > { %837 = vmatmul.f32.vlgmr.msra.gmra.mxu0 %v2708_v4  ;;  %866 = vmatpush.msra.mxu1 %v2601_v59  ;;  %v1067_v59 = vsub.f32 %v2809_v6, %v1066_v48  ;;  %v3440_v25 = vand.u32 4294901760, %v2859_v34  ;;  %v3437_v30 = vand.u32 4294901760, %v2873_v53  ;;  %v3435_v57 = vand.u32 4294901760, %v2901_v28 }
  0x90   : > { %1024 = vmatpush.msrb.mxu0 %v2790_v1  ;;  %939 = vmatpush.msra.mxu2 %v772_v29  ;;  %v2887_v2 = vsub.f32 %v995_v36, %v2855_v31  ;;  %v1080_v35 = vand.u32 4294901760, %v1079_v3  ;;  %v3428_v3 = vand.u32 4294901760, %v2954_v33 }
  0x91   : > { %976 = vmatpush.msra.mxu3 %v2627_v61  ;;  %868 = vmatpush.msra.mxu1 %v2627_v61  ;;  %v1073_v61 = vsub.f32 %v2820_v43, %v1072_v47  ;;  %v1068_v29 = vand.u32 4294901760, %v1067_v59  ;;  %v1091_v42 = vsub.f32 %v2859_v34, %v3440_v25  ;;  %v1097_v50 = vsub.f32 %v2873_v53, %v3437_v30 }
  0x92   : > { %1026 = vmatpush.msrb.mxu0 %v2798_v56  ;;  %943 = vmatpush.msra.mxu2 %v778_v10  ;;  %v1085_v10 = vsub.f32 %v2844_v13, %v1084_v5  ;;  %v3436_v4 = vand.u32 4294901760, %v2887_v2  ;;  %v1109_v32 = vsub.f32 %v2901_v28, %v3435_v57 }
  0x93   : > { %978 = vmatpush.msra.mxu3 %v2644_v7  ;;  %945 = vmatmul.f32.vlgmr.msra.gmra.mxu2 %v2689_v9  ;;  %v1074_v40 = vand.u32 4294901760, %v1073_v61  ;;  %v1092_v14 = vand.u32 4294901760, %v1091_v42  ;;  %v1098_v27 = vand.u32 4294901760, %v1097_v50  ;;  %v1016_v61 = vld [vmem:[%s2778_s8 + $0xf0] sm:$0xff]  ;;  %v2994_v42 = vsub.f32 %v987_v51, %v2964_v37 }
  0x94   : > { %1028 = vmatpush.msrb.mxu0 %v2806_v63  ;;  %1167 = vmatpush.msrb.mxu2 %v2809_v6  ;;  %v1086_v41 = vand.u32 4294901760, %v1085_v10  ;;  %v1103_v8 = vsub.f32 %v2887_v2, %v3436_v4  ;;  %v1015_v10 = vld [vmem:[%s2778_s8 + $0xe8] sm:$0xff] }
  0x95   : > { %870 = vmatpush.msra.mxu1 %v2644_v7  ;;  %980 = vmatpush.msra.mxu3 %v2661_v46  ;;  %v2891_v7 = vand.u32 4294901760, %v992_v17 }
  0x96   : > { %982 = vmatmul.f32.vlgmr.msra.gmra.mxu3 %v2689_v9  ;;  %1030 = vmatpush.msrb.mxu0 %v2817_v62  ;;  %v991_v9 = vld [vmem:[%s2778_s8 + $0x28] sm:$0xff]  ;;  %v1104_v22 = vand.u32 4294901760, %v1103_v8 }
  0x97   : > { %1170 = vmatpush.msrb.mxu2 %v2820_v43  ;;  %1220 = vmatpush.msrb.mxu3 %v2790_v1  ;;  %v2914_v11 = vand.u32 4294901760, %v991_v9  ;;  %v2920_v26 = vsub.f32 %v992_v17, %v2891_v7  ;;  %v1110_v17 = vand.u32 4294901760, %v1109_v32  ;;  %v1013_v32 = vld [vmem:[%s2778_s8 + $0xd8] sm:$0xff] }
  0x98   : > { %872 = vmatpush.msra.mxu1 %v2661_v46  ;;  %1032 = vmatpush.msrb.mxu0 %v2828_v15  ;;  %v2907_v46 = vsub.f32 %v993_v24, %v2878_v20  ;;  %v2975_v24 = vand.u32 4294901760, %v1017_v45 }
  0x99   : > { %876 = vmatmul.f32.vlgmr.msra.gmra.mxu1 %v679_v54  ;;  %1173 = vmatpush.msrb.mxu2 %v2832_v16  ;;  %v989_v54 = vld [vmem:[%s2778_s8 + $0x18] sm:$0xff]  ;;  %v2941_v60 = vsub.f32 %v991_v9, %v2914_v11  ;;  %v3431_v39 = vand.u32 4294901760, %v2920_v26  ;;  %v2983_v9 = vsub.f32 %v988_v21, %v2951_v23 }
  0x9a   : > { %1069 = vmatpush.msrb.mxu1 %v1068_v29  ;;  %1222 = vmatpush.msrb.mxu3 %v2798_v56  ;;  %v3433_v0 = vand.u32 4294901760, %v2907_v46  ;;  %v2938_v44 = vand.u32 4294901760, %v989_v54  ;;  %v2979_v29 = vand.u32 4294901760, %v986_v18  ;;  %v3002_v21 = vsub.f32 %v1017_v45, %v2975_v24 }
  0x9b   : > { %1034 = vmatpush.msrb.mxu0 %v2840_v49  ;;  %1176 = vmatpush.msrb.mxu2 %v2844_v13  ;;  %v3430_v36 = vand.u32 4294901760, %v2941_v60  ;;  %v1121_v59 = vsub.f32 %v2920_v26, %v3431_v39  ;;  %v3432_v8 = vand.u32 4294901760, %v2983_v9  ;;  %v3489_v13 = vand.u32 4294901760, %v2859_v34 }
  0x9c   : > { %1075 = vmatpush.msrb.mxu1 %v1074_v40  ;;  %1224 = vmatpush.msrb.mxu3 %v2806_v63  ;;  %v1115_v12 = vsub.f32 %v2907_v46, %v3433_v0  ;;  %v2968_v55 = vsub.f32 %v989_v54, %v2938_v44  ;;  %v2996_v54 = vand.u32 4294901760, %v1016_v61  ;;  %v3010_v51 = vsub.f32 %v986_v18, %v2979_v29 }
  0x9d   : > { %1036 = vmatpush.msrb.mxu0 %v2855_v31  ;;  %1179 = vmatpush.msrb.mxu2 %v2859_v34  ;;  %v1127_v52 = vsub.f32 %v2941_v60, %v3430_v36  ;;  %v1122_v50 = vand.u32 4294901760, %v1121_v59  ;;  %v3434_v18 = vand.u32 4294901760, %v2994_v42  ;;  %v1019_v34 = vld.sshfl [vmem:[#allocation1] sm:$0xff pattern:$0x73625140] }
  0x9e   : > { %1081 = vmatpush.msrb.mxu1 %v1080_v35  ;;  %1226 = vmatpush.msrb.mxu3 %v2817_v62  ;;  %v1116_v40 = vand.u32 4294901760, %v1115_v12  ;;  %v3429_v35 = vand.u32 4294901760, %v2968_v55  ;;  %v3025_v59 = vsub.f32 %v1016_v61, %v2996_v54  ;;  %v3439_v61 = vand.u32 4294901760, %v3010_v51 }
  0x9f   : > { %1038 = vmatpush.msrb.mxu0 %v2869_v19  ;;  %1182 = vmatpush.msrb.mxu2 %v2873_v53  ;;  %v1128_v12 = vand.u32 4294901760, %v1127_v52 }
  0xa0   : > { %1087 = vmatpush.msrb.mxu1 %v1086_v41  ;;  %1228 = vmatpush.msrb.mxu3 %v2828_v15  ;;  %v1014_v41 = vld [vmem:[%s2778_s8 + $0xe0] sm:$0xff]  ;;  %v3441_v0 = vand.u32 4294901760, %v3025_v59  ;;  %v1157_v57 = vsub.f32 %v3010_v51, %v3439_v61 }
  0xa1   : > { %1040 = vmatpush.msrb.mxu0 %v2878_v20  ;;  %1185 = vmatpush.msrb.mxu2 %v2887_v2  ;;  %v3017_v45 = vand.u32 4294901760, %v1014_v41 }
  0xa2   : > { %1093 = vmatpush.msrb.mxu1 %v1092_v14  ;;  %1230 = vmatpush.msrb.mxu3 %v2840_v49  ;;  %v1133_v14 = vsub.f32 %v2954_v33, %v3428_v3  ;;  %v1012_v3 = vld [vmem:[%s2778_s8 + $0xd0] sm:$0xff] }
  0xa3   : > { %1042 = vmatpush.msrb.mxu0 %v2891_v7  ;;  %1188 = vmatpush.msrb.mxu2 %v2901_v28  ;;  %v3044_v39 = vsub.f32 %v1014_v41, %v3017_v45 }
  0xa4   : > { %1099 = vmatpush.msrb.mxu1 %v1098_v27  ;;  %1232 = vmatpush.msrb.mxu3 %v2855_v31  ;;  %v3012_v27 = vand.u32 4294901760, %v1015_v10  ;;  %v1134_v52 = vand.u32 4294901760, %v1133_v14 }
  0xa5   : > { %1044 = vmatpush.msrb.mxu0 %v2914_v11  ;;  %1191 = vmatpush.msrb.mxu2 %v2907_v46 }
  0xa6   : > { %1105 = vmatpush.msrb.mxu1 %v1104_v22  ;;  %1234 = vmatpush.msrb.mxu3 %v2869_v19  ;;  %v1139_v22 = vsub.f32 %v2968_v55, %v3429_v35  ;;  %v1145_v35 = vsub.f32 %v2983_v9, %v3432_v8  ;;  %v3039_v36 = vsub.f32 %v1015_v10, %v3012_v27  ;;  %v3052_v10 = vand.u32 4294901760, %v1012_v3 }
  0xa7   : > { %1046 = vmatpush.msrb.mxu0 %v2927_v58  ;;  %1194 = vmatpush.msrb.mxu2 %v2920_v26  ;;  %v1151_v8 = vsub.f32 %v2994_v42, %v3434_v18 }
  0xa8   : > { %1111 = vmatpush.msrb.mxu1 %v1110_v17  ;;  %1236 = vmatpush.msrb.mxu3 %v2878_v20  ;;  %v3438_v17 = vand.u32 4294901760, %v3002_v21  ;;  %v1140_v14 = vand.u32 4294901760, %v1139_v22  ;;  %v1010_v22 = vld [vmem:[%s2778_s8 + $0xc0] sm:$0xff]  ;;  %v1146_v18 = vand.u32 4294901760, %v1145_v35  ;;  %v3442_v4 = vand.u32 4294901760, %v3039_v36 }
  0xa9   : > { %1048 = vmatpush.msrb.mxu0 %v2938_v44  ;;  %1197 = vmatpush.msrb.mxu2 %v2941_v60  ;;  %v1152_v35 = vand.u32 4294901760, %v1151_v8  ;;  %v3080_v61 = vsub.f32 %v1012_v3, %v3052_v10  ;;  %v3082_v25 = vand.u32 4294901760, %v1010_v22  ;;  %v1158_v8 = vand.u32 4294901760, %v1157_v57  ;;  %v1007_v57 = vld [vmem:[%s2778_s8 + $0xa8] sm:$0xff] }
  0xaa   : > { %1117 = vmatpush.msrb.mxu1 %v1116_v40  ;;  %1238 = vmatpush.msrb.mxu3 %v2891_v7  ;;  %v3030_v40 = vand.u32 4294901760, %v1013_v32  ;;  %v1408_v41 = vsub.f32 %v3002_v21, %v3438_v17  ;;  %v1414_v17 = vsub.f32 %v3025_v59, %v3441_v0  ;;  %v1420_v3 = vsub.f32 %v3039_v36, %v3442_v4 }
  0xab   : > { %1050 = vmatpush.msrb.mxu0 %v2951_v23  ;;  %1200 = vmatpush.msrb.mxu2 %v2954_v33 }
  0xac   : > { %1123 = vmatpush.msrb.mxu1 %v1122_v50  ;;  %1240 = vmatpush.msrb.mxu3 %v2914_v11  ;;  %v1011_v50 = vld [vmem:[%s2778_s8 + $0xc8] sm:$0xff]  ;;  %v1409_v6 = vand.u32 4294901760, %v1408_v41  ;;  %v1005_v41 = vld [vmem:[%s2778_s8 + $0x98] sm:$0xff] }
  0xad   : > { %1052 = vmatpush.msrb.mxu0 %v2964_v37  ;;  %1203 = vmatpush.msrb.mxu2 %v2968_v55  ;;  %v3068_v30 = vand.u32 4294901760, %v1011_v50 }
  0xae   : > { %1129 = vmatpush.msrb.mxu1 %v1128_v12  ;;  %1242 = vmatpush.msrb.mxu3 %v2927_v58  ;;  %v3060_v12 = vsub.f32 %v1013_v32, %v3030_v40  ;;  %v3443_v32 = vand.u32 4294901760, %v3044_v39 }
  0xaf   : > { %1054 = vmatpush.msrb.mxu0 %v2979_v29  ;;  %1206 = vmatpush.msrb.mxu2 %v2983_v9  ;;  %v3094_v0 = vsub.f32 %v1011_v50, %v3068_v30  ;;  %v3108_v50 = vsub.f32 %v1010_v22, %v3082_v25 }
  0xb0   : > { %1135 = vmatpush.msrb.mxu1 %v1134_v52  ;;  %1244 = vmatpush.msrb.mxu3 %v2938_v44  ;;  %v1009_v52 = vld [vmem:[%s2778_s8 + $0xb8] sm:$0xff] }
  0xb1   : > { %1261 = vmatpush.msra.mxu0 %v1066_v48  ;;  %1209 = vmatpush.msrb.mxu2 %v2994_v42  ;;  %v3444_v48 = vand.u32 4294901760, %v3060_v12  ;;  %v3096_v43 = vand.u32 4294901760, %v1009_v52 }
  0xb2   : > { %1141 = vmatpush.msrb.mxu1 %v1140_v14  ;;  %1246 = vmatpush.msrb.mxu3 %v2951_v23  ;;  %v1008_v14 = vld [vmem:[%s2778_s8 + $0xb0] sm:$0xff] }
  0xb3   : > { %1265 = vmatpush.msra.mxu0 %v1072_v47  ;;  %1212 = vmatpush.msrb.mxu2 %v3010_v51  ;;  %v1426_v47 = vsub.f32 %v3044_v39, %v3443_v32  ;;  %v3110_v4 = vand.u32 4294901760, %v1008_v14  ;;  %v1432_v16 = vsub.f32 %v3060_v12, %v3444_v48  ;;  %v3121_v22 = vsub.f32 %v1009_v52, %v3096_v43 }
  0xb4   : > { %1147 = vmatpush.msrb.mxu1 %v1146_v18  ;;  %1248 = vmatpush.msrb.mxu3 %v2964_v37  ;;  %v1415_v18 = vand.u32 4294901760, %v1414_v17  ;;  %v1421_v17 = vand.u32 4294901760, %v1420_v3  ;;  %v3123_v32 = vand.u32 4294901760, %v1007_v57  ;;  %v3446_v52 = vand.u32 4294901760, %v3108_v50 }
  0xb5   : > { %1269 = vmatpush.msra.mxu0 %v1078_v38  ;;  %1365 = vmatpush.msra.mxu2 %v2975_v24  ;;  %v1006_v38 = vld [vmem:[%s2778_s8 + $0xa0] sm:$0xff]  ;;  %v3135_v3 = vsub.f32 %v1008_v14, %v3110_v4  ;;  %v3447_v14 = vand.u32 4294901760, %v3121_v22 }
  0xb6   : > { %1153 = vmatpush.msrb.mxu1 %v1152_v35  ;;  %1250 = vmatpush.msrb.mxu3 %v2979_v29  ;;  %v3445_v35 = vand.u32 4294901760, %v3094_v0  ;;  %v3137_v48 = vand.u32 4294901760, %v1006_v38 }
  0xb7   : > { %1273 = vmatpush.msra.mxu0 %v1084_v5  ;;  %1367 = vmatpush.msra.mxu2 %v2996_v54  ;;  %v1427_v5 = vand.u32 4294901760, %v1426_v47  ;;  %v1433_v47 = vand.u32 4294901760, %v1432_v16 }
  0xb8   : > { %1410 = vmatpush.msra.mxu3 %v1409_v6  ;;  %1159 = vmatpush.msrb.mxu1 %v1158_v8  ;;  %v3490_v6 = vand.u32 4294901760, %v3080_v61 }
  0xb9   : > { %1277 = vmatpush.msra.mxu0 %v3489_v13  ;;  %1369 = vmatpush.msra.mxu2 %v3012_v27  ;;  %v3148_v13 = vsub.f32 %v1007_v57, %v3123_v32  ;;  %v1461_v57 = vand.u32 4294901760, %v3135_v3 }
  0xba   : > { %1328 = vmatpush.msra.mxu1 %v2790_v1  ;;  %1416 = vmatpush.msra.mxu3 %v1415_v18  ;;  %v1438_v8 = vsub.f32 %v3080_v61, %v3490_v6  ;;  %v3491_v1 = vand.u32 4294901760, %v2873_v53  ;;  %v1444_v18 = vsub.f32 %v3094_v0, %v3445_v35  ;;  %v3150_v6 = vand.u32 4294901760, %v1005_v41  ;;  %v1004_v53 = vld [vmem:[%s2778_s8 + $0x90] sm:$0xff] }
  0xbb   : > { %1371 = vmatpush.msra.mxu2 %v3017_v45  ;;  %v3164_v35 = vsub.f32 %v1006_v38, %v3137_v48 }
  0xbc   : > { %1281 = vmatpush.msra.mxu0 %v3491_v1  ;;  %1330 = vmatpush.msra.mxu1 %v2798_v56  ;;  %v3492_v1 = vand.u32 4294901760, %v2887_v2  ;;  %v3156_v56 = vand.u32 4294901760, %v1019_v34  ;;  %v1439_v16 = vand.u32 4294901760, %v1438_v8  ;;  %v1003_v2 = vld [vmem:[%s2778_s8 + $0x88] sm:$0xff]  ;;  %v1456_v8 = vsub.f32 %v3121_v22, %v3447_v14 }
  0xbd   : > { %1422 = vmatpush.msra.mxu3 %v1421_v17  ;;  %1373 = vmatpush.msra.mxu2 %v3030_v40  ;;  %v1450_v17 = vsub.f32 %v3108_v50, %v3446_v52  ;;  %v3448_v52 = vand.u32 4294901760, %v3148_v13  ;;  %v3178_v38 = vsub.f32 %v1005_v41, %v3150_v6  ;;  %v1462_v41 = vsub.f32 %v3135_v3, %v1461_v57 }
  0xbe   : > { %1285 = vmatpush.msra.mxu0 %v3492_v1  ;;  %1332 = vmatpush.msra.mxu1 %v2806_v63  ;;  %v3493_v1 = vand.u32 4294901760, %v2901_v28  ;;  %v3170_v63 = vand.u32 4294901760, %v1004_v53  ;;  %v3494_v28 = vand.u32 4294901760, %v2907_v46  ;;  %v1473_v14 = vand.u32 4294901760, %v3164_v35 }
  0xbf   : > { %1428 = vmatpush.msra.mxu3 %v1427_v5  ;;  %1375 = vmatpush.msra.mxu2 %v3052_v10  ;;  %v1445_v5 = vand.u32 4294901760, %v1444_v18  ;;  %v1451_v18 = vand.u32 4294901760, %v1450_v17  ;;  %v3495_v46 = vand.u32 4294901760, %v2920_v26  ;;  %v1479_v17 = vand.u32 4294901760, %v3178_v38 }
  0xc0   : > { %1289 = vmatpush.msra.mxu0 %v3493_v1  ;;  %1334 = vmatpush.msra.mxu1 %v2817_v62  ;;  %v3184_v62 = vsub.f32 %v1019_v34, %v3156_v56  ;;  %v3186_v1 = vand.u32 4294901760, %v1003_v2  ;;  %v1457_v34 = vand.u32 4294901760, %v1456_v8  ;;  %v3496_v26 = vand.u32 4294901760, %v2941_v60 }
  0xc1   : > { %1434 = vmatpush.msra.mxu3 %v1433_v47  ;;  %v1002_v47 = vld [vmem:[%s2778_s8 + $0x80] sm:$0xff]  ;;  %1377 = vmatpush.msra.mxu2 %v3068_v30  ;;  %v1474_v8 = vsub.f32 %v3164_v35, %v1473_v14 }
  0xc2   : > { %1293 = vmatpush.msra.mxu0 %v3494_v28  ;;  %1336 = vmatpush.msra.mxu1 %v2828_v15  ;;  %v3198_v15 = vsub.f32 %v1004_v53, %v3170_v63  ;;  %v3205_v28 = vand.u32 4294901760, %v1002_v47  ;;  %v3212_v53 = vsub.f32 %v1003_v2, %v3186_v1  ;;  %v1480_v2 = vsub.f32 %v3178_v38, %v1479_v17 }
  0xc3   : > { %1440 = vmatpush.msra.mxu3 %v1439_v16  ;;  %1379 = vmatpush.msra.mxu2 %v3082_v25  ;;  %v1468_v16 = vsub.f32 %v3148_v13, %v3448_v52  ;;  %v3497_v52 = vand.u32 4294901760, %v2954_v33 }
  0xc4   : > { %1297 = vmatpush.msra.mxu0 %v3495_v46  ;;  %1338 = vmatpush.msra.mxu1 %v2840_v49  ;;  %v1057_v49 = vand.u32 4294901760, %v3184_v62  ;;  %v1020_v46 = vld.sshfl [vmem:[#allocation1 + $0x8] sm:$0xff pattern:$0x73625140]  ;;  %v1491_v33 = vand.u32 4294901760, %v3212_v53 }
  0xc5   : > { %1446 = vmatpush.msra.mxu3 %v1445_v5  ;;  %1381 = vmatpush.msra.mxu2 %v3096_v43  ;;  %v1463_v5 = vand.u32 4294901760, %v1462_v41  ;;  %v1469_v60 = vand.u32 4294901760, %v1468_v16  ;;  %v3498_v41 = vand.u32 4294901760, %v2968_v55  ;;  %v3499_v16 = vand.u32 4294901760, %v2983_v9 }
  0xc6   : > { %1301 = vmatpush.msra.mxu0 %v3496_v26  ;;  %1340 = vmatpush.msra.mxu1 %v2855_v31  ;;  %v1485_v31 = vand.u32 4294901760, %v3198_v15  ;;  %v3500_v26 = vand.u32 4294901760, %v2994_v42 }
  0xc7   : > { %1452 = vmatpush.msra.mxu3 %v1451_v18  ;;  %1383 = vmatpush.msra.mxu2 %v3110_v4  ;;  %v3227_v18 = vsub.f32 %v1002_v47, %v3205_v28 }
  0xc8   : > { %1305 = vmatpush.msra.mxu0 %v3497_v52  ;;  %1342 = vmatpush.msra.mxu1 %v2869_v19  ;;  %v1058_v19 = vsub.f32 %v3184_v62, %v1057_v49  ;;  %v3234_v52 = vand.u32 4294901760, %v1020_v46  ;;  %v1486_v55 = vsub.f32 %v3198_v15, %v1485_v31 }
  0xc9   : > { %1458 = vmatpush.msra.mxu3 %v1457_v34  ;;  %1385 = vmatpush.msra.mxu2 %v3123_v32  ;;  %v1475_v34 = vand.u32 4294901760, %v1474_v8  ;;  %v1497_v47 = vand.u32 4294901760, %v3227_v18  ;;  %v3501_v8 = vand.u32 4294901760, %v3010_v51  ;;  %v3502_v51 = vand.u32 4294901760, %v3002_v21 }
  0xca   : > { %1309 = vmatpush.msra.mxu0 %v3498_v41  ;;  %1344 = vmatpush.msra.mxu1 %v2878_v20  ;;  %v1481_v20 = vand.u32 4294901760, %v1480_v2  ;;  %v3252_v9 = vsub.f32 %v1020_v46, %v3234_v52  ;;  %v1487_v42 = vand.u32 4294901760, %v1486_v55 }
  0xcb   : > { %1464 = vmatpush.msra.mxu3 %v1463_v5  ;;  %1387 = vmatpush.msra.mxu2 %v3137_v48  ;;  %v1059_v5 = vand.u32 4294901760, %v1058_v19 }
  0xcc   : > { %1313 = vmatpush.msra.mxu0 %v3499_v16  ;;  %1346 = vmatpush.msra.mxu1 %v2891_v7  ;;  %v1492_v7 = vsub.f32 %v3212_v53, %v1491_v33 }
  0xcd   : > { %1470 = vmatpush.msra.mxu3 %v1469_v60  ;;  %1389 = vmatpush.msra.mxu2 %v3150_v6  ;;  %v1398_v60 = vand.u32 4294901760, %v3252_v9 }
  0xce   : > { %1317 = vmatpush.msra.mxu0 %v3500_v26  ;;  %1348 = vmatpush.msra.mxu1 %v2914_v11  ;;  %v1498_v11 = vsub.f32 %v3227_v18, %v1497_v47  ;;  %v1493_v46 = vand.u32 4294901760, %v1492_v7 }
  0xcf   : > { %1476 = vmatpush.msra.mxu3 %v1475_v34  ;;  %1391 = vmatpush.msra.mxu2 %v3170_v63 }
  0xd0   : > { %1321 = vmatpush.msra.mxu0 %v3501_v8  ;;  %1350 = vmatpush.msra.mxu1 %v2927_v58  ;;  %v1499_v58 = vand.u32 4294901760, %v1498_v11 }
  0xd1   : > { %1482 = vmatpush.msra.mxu3 %v1481_v20  ;;  %1060 = vmatmul.f32.vlgmr.msrb.gmra.mxu0 %v1059_v5 }
  0xd2   : > { %1352 = vmatpush.msra.mxu1 %v2938_v44  ;;  %1508 = vmatpush.msrb.mxu0 %v3002_v21  ;;  %v1399_v44 = vsub.f32 %v3252_v9, %v1398_v60  ;;  %v3504_v21 = vand.u32 4294901760, %v3039_v36 }
  0xd3   : > { %1393 = vmatpush.msra.mxu2 %v3186_v1  ;;  %1488 = vmatpush.msra.mxu3 %v1487_v42 }
  0xd4   : > { %1215 = vmatmul.f32.vlgmr.msrb.gmra.mxu2 %v3184_v62  ;;  %1511 = vmatpush.msrb.mxu0 %v3025_v59  ;;  %v1400_v62 = vand.u32 4294901760, %v1399_v44 }
  0xd5   : > { %1354 = vmatpush.msra.mxu1 %v2951_v23  ;;  %1395 = vmatpush.msra.mxu2 %v3205_v28  ;;  %v3503_v23 = vand.u32 4294901760, %v3025_v59 }
  0xd6   : > { %1494 = vmatpush.msra.mxu3 %v1493_v46  ;;  %1514 = vmatpush.msrb.mxu0 %v3039_v36  ;;  %v3506_v36 = vand.u32 4294901760, %v3060_v12  ;;  %v2127_v46 = vmov 0.0  }
  0xd7   : > { %1254 = vmatmul.f32.vlgmr.msrb.gmra.mxu3 %v1057_v49  ;;  %1602 = vmatpush.msrb.mxu2 %v3502_v51 }
  0xd8   : > { %1356 = vmatpush.msra.mxu1 %v2964_v37  ;;  %1500 = vmatpush.msra.mxu3 %v1499_v58  ;;  %v3505_v37 = vand.u32 4294901760, %v3044_v39 }
  0xd9   : > { %1161 = vmatmul.f32.vlgmr.msrb.gmra.mxu1 %v3156_v56  ;;  %1517 = vmatpush.msrb.mxu0 %v3044_v39  ;;  %v3507_v39 = vand.u32 4294901760, %v3080_v61 }
  0xda   : > { %1606 = vmatpush.msrb.mxu2 %v3503_v23  ;;  %1669 = vmatpush.msrb.mxu3 %v2975_v24 }
  0xdb   : > { %1358 = vmatpush.msra.mxu1 %v2979_v29  ;;  %1520 = vmatpush.msrb.mxu0 %v3060_v12  ;;  %v3509_v29 = vand.u32 4294901760, %v3108_v50 }
  0xdc   : > { %1610 = vmatpush.msrb.mxu2 %v3504_v21  ;;  %1671 = vmatpush.msrb.mxu3 %v2996_v54 }
  0xdd   : > { %1561 = vmatpush.msrb.mxu1 %v2975_v24  ;;  %1401 = vmatmul.f32.vlgmr.msra.gmra.mxu2 %v1400_v62  ;;  %v3508_v24 = vand.u32 4294901760, %v3094_v0 }
  0xde   : > { %1523 = vmatpush.msrb.mxu0 %v3080_v61  ;;  %1614 = vmatpush.msrb.mxu2 %v3505_v37 }
  0xdf   : > { %1563 = vmatpush.msrb.mxu1 %v2996_v54  ;;  %1673 = vmatpush.msrb.mxu3 %v3012_v27  ;;  %v3510_v54 = vand.u32 4294901760, %v3121_v22 }
  0xe0   : > { %1323 = vmatmul.f32.vlgmr.msra.gmra.mxu0 %v3156_v56  ;;  %1502 = vmatmul.f32.vlgmr.msra.gmra.mxu3 %v3234_v52 }
  0xe1   : > { %1526 = vmatpush.msrb.mxu0 %v3094_v0  ;;  %1565 = vmatpush.msrb.mxu1 %v3012_v27 }
  0xe2   : > { %1618 = vmatpush.msrb.mxu2 %v3506_v36  ;;  %1675 = vmatpush.msrb.mxu3 %v3017_v45 }
  0xe3   : > { %1360 = vmatmul.f32.vlgmr.msra.gmra.mxu1 %v3156_v56  ;;  %1529 = vmatpush.msrb.mxu0 %v3108_v50 }
  0xe4   : > { %1567 = vmatpush.msrb.mxu1 %v3017_v45  ;;  %1622 = vmatpush.msrb.mxu2 %v3507_v39 }
  0xe5   : > { %1677 = vmatpush.msrb.mxu3 %v3030_v40  ;;  %1532 = vmatpush.msrb.mxu0 %v3121_v22 }
  0xe6   : > { %1569 = vmatpush.msrb.mxu1 %v3030_v40  ;;  %1626 = vmatpush.msrb.mxu2 %v3508_v24 }
  0xe7   : > { %1679 = vmatpush.msrb.mxu3 %v3052_v10  ;;  %1535 = vmatpush.msrb.mxu0 %v3135_v3 }
  0xe8   : > { %1571 = vmatpush.msrb.mxu1 %v3052_v10  ;;  %1630 = vmatpush.msrb.mxu2 %v3509_v29 }
  0xe9   : > { %1681 = vmatpush.msrb.mxu3 %v3068_v30  ;;  %1538 = vmatpush.msrb.mxu0 %v3148_v13 }
  0xea   : > { %1573 = vmatpush.msrb.mxu1 %v3068_v30  ;;  %1634 = vmatpush.msrb.mxu2 %v3510_v54  ;;  %v3511_v30 = vand.u32 4294901760, %v3148_v13 }
  0xeb   : > { %1683 = vmatpush.msrb.mxu3 %v3082_v25  ;;  %1541 = vmatpush.msrb.mxu0 %v3164_v35 }
  0xec   : > { %1575 = vmatpush.msrb.mxu1 %v3082_v25  ;;  %1638 = vmatpush.msrb.mxu2 %v1461_v57 }
  0xed   : > { %1685 = vmatpush.msrb.mxu3 %v3096_v43  ;;  %1544 = vmatpush.msrb.mxu0 %v3178_v38 }
  0xee   : > { %1577 = vmatpush.msrb.mxu1 %v3096_v43  ;;  %1642 = vmatpush.msrb.mxu2 %v3511_v30 }
  0xef   : > { %1687 = vmatpush.msrb.mxu3 %v3110_v4  ;;  %1547 = vmatpush.msrb.mxu0 %v3198_v15  ;;  %v443_v25 = vpop.f32.mrf.mxu1 }
  0xf0   : > { %1579 = vmatpush.msrb.mxu1 %v3110_v4  ;;  %1646 = vmatpush.msrb.mxu2 %v1473_v14  ;;  %v342_v4 = vpop.f32.mrf.mxu0 }
  0xf1   : > { %1689 = vmatpush.msrb.mxu3 %v3123_v32  ;;  %1550 = vmatpush.msrb.mxu0 %v3212_v53  ;;  %v497_v0 = vpop.f32.mrf.mxu2  ;;  %v536_v27 = vpop.f32.mrf.mxu3 }
  0xf2   : > { %1581 = vmatpush.msrb.mxu1 %v3123_v32  ;;  %1650 = vmatpush.msrb.mxu2 %v1479_v17 }
  0xf3   : > { %1691 = vmatpush.msrb.mxu3 %v3137_v48  ;;  %1553 = vmatpush.msrb.mxu0 %v3227_v18 }
  0xf4   : > { %1583 = vmatpush.msrb.mxu1 %v3137_v48  ;;  %1654 = vmatpush.msrb.mxu2 %v1485_v31  ;;  %v444_v48 = vadd.f32 %v443_v25, %v342_v4 }
  0xf5   : > { %1693 = vmatpush.msrb.mxu3 %v3150_v6  ;;  %1556 = vmatmul.f32.vlgmr.msrb.gmra.mxu0 %v3252_v9 }
  0xf6   : > { %1585 = vmatpush.msrb.mxu1 %v3150_v6  ;;  %1658 = vmatpush.msrb.mxu2 %v1491_v33  ;;  %v498_v35 = vadd.f32 %v497_v0, %v444_v48 }
  0xf7   : > { %1695 = vmatpush.msrb.mxu3 %v3170_v63 }
  0xf8   : > { %1587 = vmatpush.msrb.mxu1 %v3170_v63  ;;  %1662 = vmatpush.msrb.mxu2 %v1497_v47  ;;  %v605_v59 = vpop.f32.mrf.mxu0  ;;  %v537_v13 = vadd.f32 %v536_v27, %v498_v35 }
  0xf9   : > { %1697 = vmatpush.msrb.mxu3 %v3186_v1  ;;  %1664 = vmatmul.f32.vlgmr.msrb.gmra.mxu2 %v3234_v52  ;;  %v642_v45 = vpop.f32.mrf.mxu1 }
  0xfa   : > { %1589 = vmatpush.msrb.mxu1 %v3186_v1  ;;  %v683_v40 = vpop.f32.mrf.mxu2  ;;  %v606_v57 = vadd.f32 %v605_v59, %v537_v13 }
  0xfb   : > { %1699 = vmatpush.msrb.mxu3 %v3205_v28 }
  0xfc   : > { %1701 = vmatmul.f32.vlgmr.msrb.gmra.mxu3 %v3234_v52  ;;  %1591 = vmatpush.msrb.mxu1 %v3205_v28  ;;  %v643_v1 = vadd.f32 %v642_v45, %v606_v57 }
  0xfd   : > { %1595 = vmatmul.f32.vlgmr.msrb.gmra.mxu1 %v1398_v60  ;;  %v784_v61 = vpop.f32.mrf.mxu3 }
  0xfe   : > { %v684_v28 = vadd.f32 %v683_v40, %v643_v1 }
 0x100   : > { %v785_v31 = vadd.f32 %v784_v61, %v684_v28 }
 0x10c   : > { %v838_v12 = vpop.f32.mrf.mxu0 }
 0x10d   : > { %v839_v18 = vadd.f32 %v838_v12, %v785_v31 }
 0x116   : > { %v877_v10 = vpop.f32.mrf.mxu1  ;;  %v946_v32 = vpop.f32.mrf.mxu2 }
 0x117   : > { %v878_v19 = vadd.f32 %v877_v10, %v839_v18 }
 0x119   : > { %v983_v43 = vpop.f32.mrf.mxu3  ;;  %v947_v16 = vadd.f32 %v946_v32, %v878_v19 }
 0x11b   : > { %v984_v26 = vadd.f32 %v983_v43, %v947_v16 }
 0x11d   : > { %v1705_v8 = vmul.f32 %v984_v26, %v984_v26 }
 0x14e   : > { %v1061_v22 = vpop.f32.mrf.mxu0 }
 0x156   : > { %v1162_v50 = vpop.f32.mrf.mxu1 }
 0x157   : > { %v1163_v3 = vadd.f32 %v1162_v50, %v1061_v22  ;;  %v1216_v14 = vpop.f32.mrf.mxu2 }
 0x159   : > { %v1217_v6 = vadd.f32 %v1216_v14, %v1163_v3 }
 0x15a   : > { %v1255_v56 = vpop.f32.mrf.mxu3 }
 0x15b   : > { %v1256_v63 = vadd.f32 %v1255_v56, %v1217_v6 }
 0x15d   : > { %v1324_v38 = vpop.f32.mrf.mxu0 }
 0x15e   : > { %v1325_v15 = vadd.f32 %v1324_v38, %v1256_v63 }
 0x160   : > { %v1361_v17 = vpop.f32.mrf.mxu1  ;;  %v1402_v53 = vpop.f32.mrf.mxu2 }
 0x161   : > { %v1362_v49 = vadd.f32 %v1361_v17, %v1325_v15 }
 0x163   : > { %v1403_v2 = vadd.f32 %v1402_v53, %v1362_v49  ;;  %v1503_v41 = vpop.f32.mrf.mxu3 }
 0x165   : > { %v1504_v52 = vadd.f32 %v1503_v41, %v1403_v2 }
 0x172   : > { %v1557_v33 = vpop.f32.mrf.mxu0 }
 0x173   : > { %v1558_v34 = vadd.f32 %v1557_v33, %v1504_v52 }
 0x17a   : > { %v1596_v55 = vpop.f32.mrf.mxu1 }
 0x17b   : > { %v1597_v20 = vadd.f32 %v1596_v55, %v1558_v34 }
 0x17c   : > { %v1665_v47 = vpop.f32.mrf.mxu2 }
 0x17d   : > { %v1666_v5 = vadd.f32 %v1665_v47, %v1597_v20 }
 0x17f   : > { %v1702_v7 = vpop.f32.mrf.mxu3 }
 0x180   : > { %v1703_v9 = vadd.f32 %v1702_v7, %v1666_v5 }
 0x182   : > { %v1706_v42 = vmul.f32 %v1703_v9, %v1703_v9 }
 0x184   : > { %v1707_v11 = vadd.f32 %v1706_v42, %v1705_v8 }
 0x186   : > { %vm1708_vm0 = vcmp.gt.f32.partialorder %v1707_v11, 0.04 }
 0x187   : > { %v1858_v60 = vsel %vm1708_vm0, 1.0, %v2127_v46 }
 0x188   : > { %1711 = vst [vmem:[%s264_s29] sm:$0x3] %v1858_v60 }
 0x189   : > { %2062 = shalt.err (!%p2059_p13)
}
 0x18a   : > { %1871 = dma.vmem_to_hbm [thread:$0]  (%p2237_p0), %s1728_s30, 32, %s1730_s4, %s1713_s15  }
 0x18b PF: > { %s1741_s22 = sand.u32 1, %s2101_s12   ;;  %p1885_p4 = pnand %p1848_p3, %p2241_p2 }
 0x18c   : > { %s1742_s8 = scalar_lea.sflag [#allocation4], %s1741_s22 }
 0x18d   : > { %p1886_p5 = pneg %p1885_p4 }
 0x18f   : > { %2096 = dma.done.wait (%p1886_p5), %s1742_s8, 32  }
 0x190   : > { %2098 = vsyncadd (%p1886_p5), %s1742_s8, 4294967264  ;;  %s20_s17 = sadd.s32 1, %s2121_s17   ;;  %s3512_s12 = smov %s2105_s13 }
 0x191   : > { %p17_p6 = scmp.ge.s32.totalorder %s20_s17, 4   ;;  %s3513_s13 = smov %s2109_s14 }
 0x192   : > { %s3514_s14 = smov %s2200_s25  ;;  %s3515_s15 = smov %s2117_s16 }
 0x193   : > { %s3516_s16 = smov %s3518_s18  ;;  %19 = sbr.rel (!%p17_p6) target bundleno = 7 (0x7), region = 94 }
 0x198   :  { %1748 = vsyncpa [#allocation3], 1 }
 0x199   :  { %1750 = vsyncpa [#allocation3 + $0x1], 1 }
 0x19a   :  { %1751 = vsyncpa [#allocation6], 1 }
 0x19b   :  { %1753 = vsyncpa [#allocation6 + $0x1], 1 }
 0x19c   :  { %1754 = vsyncpa [#allocation4], 1 }
 0x19d   :  { %1756 = vsyncpa [#allocation4 + $0x1], 1 }

</bundles_post_ra>
